<compile_context>
chip_gen: v6e
topology: v6e:2x2x1
jax: 0.10.0
libtpu: 0.0.40
codegen_flags: <defaults>
</compile_context>

<pallas_src>
import jax
import jax.numpy as jnp
from jax import lax
from jax.experimental import pallas as pl
from jax.experimental.pallas import tpu as pltpu


def _round_up(x, m):
    return (x + m - 1) // m * m


def lstm_regressor_kernel(x_ref, wih_ref, whh_ref, b_ref, wfc_ref, bfc_ref,
                          out_ref, xproj_ref):
    """Whole-sequence LSTM + Linear head in one invocation.

    x_ref     : (T*Bp, I)   time-major, batch padded to a sublane multiple
    wih_ref   : (I, 4*Hp)   gate columns [i, f, o, g]; i/f/o pre-scaled by 0.5
    whh_ref   : (Hp, 4*Hp)  same column layout / scaling
    b_ref     : (1, 4*Hp)   b_ih + b_hh, same layout / scaling (f32)
    wfc_ref   : (Hp, 1)
    bfc_ref   : (1, 1)
    out_ref   : (Bp, 1)
    xproj_ref : (T*Bp, 4*Hp) VMEM scratch for the hoisted input projection
    """
    TBp = x_ref.shape[0]
    Hp = whh_ref.shape[0]          # padded hidden size (multiple of 128)
    Bp = out_ref.shape[0]          # padded batch (multiple of 8)
    T = TBp // Bp

    mm_dtype = wih_ref.dtype       # f32, or bf16 on v6e/v7x

    # --- Hoisted input projection: one MXU call for all timesteps, into scratch.
    xproj_ref[...] = (jnp.dot(x_ref[...].astype(mm_dtype), wih_ref[...],
                              preferred_element_type=jnp.float32)
                      + b_ref[...])                              # (T*Bp, 4*Hp) f32

    h0 = jnp.zeros((Bp, Hp), jnp.float32)
    c0 = jnp.zeros((Bp, Hp), jnp.float32)

    def step(xp_t, h, c):
        # xp_t: (Bp, 4Hp) tile-aligned slice of the hoisted projection.
        gates = xp_t + jnp.dot(h.astype(mm_dtype), whh_ref[...],
                               preferred_element_type=jnp.float32)   # (Bp, 4Hp)
        # Single contiguous EUP launch over the whole slab.  Because the i/f/o
        # columns were pre-scaled by 0.5, sigmoid(z) = 0.5*(tanh(z/2)+1).
        t_all = jnp.tanh(gates)
        s = 0.5 * (t_all[:, :3 * Hp] + 1.0)     # [i | f | o] sigmoids
        g = t_all[:, 3 * Hp:]                   # [g] tanh
        i_g = s[:, :Hp]
        f_g = s[:, Hp:2 * Hp]
        o_g = s[:, 2 * Hp:3 * Hp]
        c = f_g * c + i_g * g
        h = o_g * jnp.tanh(c)
        return h, c

    if T <= 16:
        # Fully unrolled: static whole-tile slices of the scratch ref.
        h, c = h0, c0
        for t in range(T):
            h, c = step(xproj_ref[t * Bp:(t + 1) * Bp, :], h, c)
    else:
        def body(t, carry):
            h, c = carry
            row = pl.multiple_of(t * Bp, 8)
            return step(xproj_ref[pl.ds(row, Bp), :], h, c)
        h, c = lax.fori_loop(0, T, body, (h0, c0), unroll=2)

    # --- Linear head on the last hidden state (off the recurrent loop) -----
    out_ref[...] = (jnp.dot(h, wfc_ref[...],
                            preferred_element_type=jnp.float32)
                    + bfc_ref[...]).astype(out_ref.dtype)


def lstm_regressor_forward(x, params, *, matmul_dtype=jnp.float32):
    """x: (B, T, I) float32, batch_first like the PyTorch module.
    Returns (B,) float32 — matches `self.fc(out[:, -1, :]).squeeze(1)`.

    matmul_dtype=jnp.bfloat16 feeds the MXU bf16 operands (recommended on
    v6e/v7x); accumulation and all elementwise math stay f32."""
    B, T, I = x.shape
    w_ih, w_hh = params["weight_ih_l0"], params["weight_hh_l0"]   # (4H,I), (4H,H)
    b_ih, b_hh = params["bias_ih_l0"], params["bias_hh_l0"]       # (4H,), (4H,)
    fc_w, fc_b = params["fc_weight"], params["fc_bias"]           # (1,H), (1,)
    H = w_hh.shape[1]
    Hp = _round_up(H, 128)                                        # lane-aligned hidden
    Bp = _round_up(B, 8)                                          # sublane-aligned batch

    def split_pad_reorder_scale(w_t):
        """w_t: (X, 4H), PyTorch gate column order [i,f,g,o] ->
        (X, 4*Hp) in [i,f,o,g] order, each gate zero-padded to Hp lanes,
        i/f/o columns pre-scaled by 0.5 (sigmoid-via-tanh trick)."""
        w_t = jnp.asarray(w_t, jnp.float32)
        i, f, g, o = jnp.split(w_t, 4, axis=1)
        pad = lambda a: jnp.pad(a, ((0, 0), (0, Hp - H)))
        return jnp.concatenate(
            [0.5 * pad(i), 0.5 * pad(f), 0.5 * pad(o), pad(g)], axis=1)

    wih_t = split_pad_reorder_scale(w_ih.T).astype(matmul_dtype)           # (I, 4Hp)
    whh_t = jnp.pad(split_pad_reorder_scale(w_hh.T),
                    ((0, Hp - H), (0, 0))).astype(matmul_dtype)            # (Hp, 4Hp)
    b_sum = split_pad_reorder_scale((b_ih + b_hh).reshape(1, 4 * H))       # (1, 4Hp) f32
    wfc_t = jnp.pad(jnp.asarray(fc_w.T, jnp.float32),
                    ((0, Hp - H), (0, 0)))                                 # (Hp, 1)
    bfc = jnp.asarray(fc_b.reshape(1, 1), jnp.float32)

    # Time-major, batch padded to the 8-row sublane tile, flattened to 2-D so
    # every per-timestep slice inside the kernel is a whole (8,128) tile.
    x_tm = jnp.transpose(x, (1, 0, 2)).astype(jnp.float32)                 # (T, B, I)
    x_tm = jnp.pad(x_tm, ((0, 0), (0, Bp - B), (0, 0)))                    # (T, Bp, I)
    x_2d = x_tm.reshape(T * Bp, I)

    out = pl.pallas_call(
        lstm_regressor_kernel,
        out_shape=jax.ShapeDtypeStruct((Bp, 1), jnp.float32),
        in_specs=[pl.BlockSpec(memory_space=pltpu.MemorySpace.VMEM)] * 6,
        out_specs=pl.BlockSpec(memory_space=pltpu.MemorySpace.VMEM),
        scratch_shapes=[pltpu.VMEM((T * Bp, 4 * Hp), jnp.float32)],
        compiler_params=pltpu.CompilerParams(
            vmem_limit_bytes=32 * 1024 * 1024),
    )(x_2d, wih_t, whh_t, b_sum, wfc_t, bfc)

    return out[:B, 0]                                                      # (B,)


def lstm_regressor_reference(x, params):
    """Pure-JAX reference (lax.scan) with identical semantics, for checking."""
    w_ih, w_hh = params["weight_ih_l0"], params["weight_hh_l0"]
    b_ih, b_hh = params["bias_ih_l0"], params["bias_hh_l0"]
    fc_w, fc_b = params["fc_weight"], params["fc_bias"]
    H = w_hh.shape[1]
    B = x.shape[0]
    wih_t, whh_t = w_ih.T, w_hh.T
    b = (b_ih + b_hh)[None, :]

    def step(carry, x_t):
        h, c = carry
        gates = x_t @ wih_t + h @ whh_t + b
        i = jax.nn.sigmoid(gates[:, 0 * H:1 * H])
        f = jax.nn.sigmoid(gates[:, 1 * H:2 * H])
        g = jnp.tanh(gates[:, 2 * H:3 * H])
        o = jax.nn.sigmoid(gates[:, 3 * H:4 * H])
        c = f * c + i * g
        h = o * jnp.tanh(c)
        return (h, c), None

    h0 = jnp.zeros((B, H), jnp.float32)
    c0 = jnp.zeros((B, H), jnp.float32)
    (h_last, _), _ = lax.scan(step, (h0, c0), jnp.transpose(x, (1, 0, 2)))
    return (h_last @ fc_w.T + fc_b[None, :])[:, 0]


def init_params(key, input_size=4, hidden_size=64):
    """Deterministic parameter init, same shapes as nn.LSTM / nn.Linear."""
    ks = jax.random.split(key, 6)
    s = 1.0 / jnp.sqrt(hidden_size)
    u = lambda k, shp: jax.random.uniform(k, shp, jnp.float32, -s, s)
    return {
        "weight_ih_l0": u(ks[0], (4 * hidden_size, input_size)),
        "weight_hh_l0": u(ks[1], (4 * hidden_size, hidden_size)),
        "bias_ih_l0": u(ks[2], (4 * hidden_size,)),
        "bias_hh_l0": u(ks[3], (4 * hidden_size,)),
        "fc_weight": u(ks[4], (1, hidden_size)),
        "fc_bias": u(ks[5], (1,)),
    }


if __name__ == "__main__":
    B, T, I, H = 2, 8, 4, 64
    key = jax.random.PRNGKey(0)
    k_x, k_p = jax.random.split(key)
    x = jax.random.normal(k_x, (B, T, I), jnp.float32)
    params = init_params(k_p, input_size=I, hidden_size=H)

    y_ref = jax.block_until_ready(lstm_regressor_reference(x, params))

    # f32 MXU path: exact parity with the reference.
    y = jax.block_until_ready(lstm_regressor_forward(x, params))
    assert y.shape == (B,), y.shape
    assert jnp.allclose(y, y_ref, atol=1e-5, rtol=1e-5), (y, y_ref)

    # bf16 MXU-operand path (v6e/v7x fast path): looser tolerance by design.
    y_bf16 = jax.block_until_ready(
        lstm_regressor_forward(x, params, matmul_dtype=jnp.bfloat16))
    assert y_bf16.shape == (B,), y_bf16.shape
    assert jnp.allclose(y_bf16, y_ref, atol=1e-1), (y_bf16, y_ref)

    print("KERNEL_OK")
</pallas_src>

<mosaic_0001>
module attributes {stable_mosaic.version = 11 : i64} {
  func.func @lstm_regressor_kernel(%arg0: memref<64x4xf32, #tpu.memory_space<vmem>>, %arg1: memref<4x512xf32, #tpu.memory_space<vmem>>, %arg2: memref<128x512xf32, #tpu.memory_space<vmem>>, %arg3: memref<1x512xf32, #tpu.memory_space<vmem>>, %arg4: memref<128x1xf32, #tpu.memory_space<vmem>>, %arg5: memref<1x1xf32, #tpu.memory_space<vmem>>, %arg6: memref<8x1xf32, #tpu.memory_space<vmem>>, %arg7: memref<64x512xf32, #tpu.memory_space<vmem>>) attributes {dimension_semantics = [], scalar_prefetch = 0 : i64, scratch_operands = 1 : i64, tpu.core_type = #tpu.core_type<tc>} {
    %c0 = arith.constant 0 : index
    %c0_0 = arith.constant 0 : index
    %0 = vector.load %arg0[%c0, %c0_0] : memref<64x4xf32, #tpu.memory_space<vmem>>, vector<64x4xf32>
    %c0_1 = arith.constant 0 : index
    %c0_2 = arith.constant 0 : index
    %1 = vector.load %arg1[%c0_1, %c0_2] : memref<4x512xf32, #tpu.memory_space<vmem>>, vector<4x512xf32>
    %cst = arith.constant dense<0.000000e+00> : vector<64x512xf32>
    %2 = tpu.matmul %0, %1, %cst {dimension_numbers = #tpu.dot_dimension_numbers<[1], [0], [0], [1], [0, 0, 1, 1], [], []>} : vector<64x4xf32>, vector<4x512xf32>, vector<64x512xf32> -> vector<64x512xf32>
    %c0_3 = arith.constant 0 : index
    %c0_4 = arith.constant 0 : index
    %3 = vector.load %arg3[%c0_3, %c0_4] : memref<1x512xf32, #tpu.memory_space<vmem>>, vector<1x512xf32>
    %4 = vector.broadcast %3 : vector<1x512xf32> to vector<64x512xf32>
    %5 = arith.addf %2, %4 : vector<64x512xf32>
    %c0_5 = arith.constant 0 : index
    %c0_6 = arith.constant 0 : index
    %6 = vector.load %arg7[%c0_5, %c0_6] : memref<64x512xf32, #tpu.memory_space<vmem>>, vector<64x512xf32>
    tpu.vector_store %arg7[%c0_5, %c0_6], %5 {strides = array<i32>} : memref<64x512xf32, #tpu.memory_space<vmem>>, vector<64x512xf32>,
    %cst_7 = arith.constant 0.000000e+00 : f32
    %7 = vector.broadcast %cst_7 : f32 to vector<8x128xf32>
    %cst_8 = arith.constant 0.000000e+00 : f32
    %8 = vector.broadcast %cst_8 : f32 to vector<8x128xf32>
    %c0_9 = arith.constant 0 : index
    %c0_10 = arith.constant 0 : index
    %9 = vector.load %arg7[%c0_9, %c0_10] : memref<64x512xf32, #tpu.memory_space<vmem>>, vector<8x512xf32>
    %c0_11 = arith.constant 0 : index
    %c0_12 = arith.constant 0 : index
    %10 = vector.load %arg2[%c0_11, %c0_12] : memref<128x512xf32, #tpu.memory_space<vmem>>, vector<128x512xf32>
    %cst_13 = arith.constant dense<0.000000e+00> : vector<8x512xf32>
    %11 = tpu.matmul %7, %10, %cst_13 {dimension_numbers = #tpu.dot_dimension_numbers<[1], [0], [0], [1], [0, 0, 1, 1], [], []>} : vector<8x128xf32>, vector<128x512xf32>, vector<8x512xf32> -> vector<8x512xf32>
    %12 = arith.addf %9, %11 : vector<8x512xf32>
    %13 = math.tanh %12 : vector<8x512xf32>
    %14 = vector.extract_strided_slice %13 {offsets = [0, 0], sizes = [8, 384], strides = [1, 1]} : vector<8x512xf32> to vector<8x384xf32>
    %cst_14 = arith.constant 1.000000e+00 : f32
    %15 = vector.broadcast %cst_14 : f32 to vector<8x384xf32>
    %16 = arith.addf %14, %15 : vector<8x384xf32>
    %cst_15 = arith.constant 5.000000e-01 : f32
    %17 = vector.broadcast %cst_15 : f32 to vector<8x384xf32>
    %18 = arith.mulf %17, %16 : vector<8x384xf32>
    %19 = vector.extract_strided_slice %13 {offsets = [0, 384], sizes = [8, 128], strides = [1, 1]} : vector<8x512xf32> to vector<8x128xf32>
    %20 = vector.extract_strided_slice %18 {offsets = [0, 0], sizes = [8, 128], strides = [1, 1]} : vector<8x384xf32> to vector<8x128xf32>
    %21 = vector.extract_strided_slice %18 {offsets = [0, 128], sizes = [8, 128], strides = [1, 1]} : vector<8x384xf32> to vector<8x128xf32>
    %22 = vector.extract_strided_slice %18 {offsets = [0, 256], sizes = [8, 128], strides = [1, 1]} : vector<8x384xf32> to vector<8x128xf32>
    %23 = arith.mulf %21, %8 : vector<8x128xf32>
    %24 = arith.mulf %20, %19 : vector<8x128xf32>
    %25 = arith.addf %23, %24 : vector<8x128xf32>
    %26 = math.tanh %25 : vector<8x128xf32>
    %27 = arith.mulf %22, %26 : vector<8x128xf32>
    %c8 = arith.constant 8 : index
    %c0_16 = arith.constant 0 : index
    %28 = vector.load %arg7[%c8, %c0_16] : memref<64x512xf32, #tpu.memory_space<vmem>>, vector<8x512xf32>
    %c0_17 = arith.constant 0 : index
    %c0_18 = arith.constant 0 : index
    %29 = vector.load %arg2[%c0_17, %c0_18] : memref<128x512xf32, #tpu.memory_space<vmem>>, vector<128x512xf32>
    %cst_19 = arith.constant dense<0.000000e+00> : vector<8x512xf32>
    %30 = tpu.matmul %27, %29, %cst_19 {dimension_numbers = #tpu.dot_dimension_numbers<[1], [0], [0], [1], [0, 0, 1, 1], [], []>} : vector<8x128xf32>, vector<128x512xf32>, vector<8x512xf32> -> vector<8x512xf32>
    %31 = arith.addf %28, %30 : vector<8x512xf32>
    %32 = math.tanh %31 : vector<8x512xf32>
    %33 = vector.extract_strided_slice %32 {offsets = [0, 0], sizes = [8, 384], strides = [1, 1]} : vector<8x512xf32> to vector<8x384xf32>
    %cst_20 = arith.constant 1.000000e+00 : f32
    %34 = vector.broadcast %cst_20 : f32 to vector<8x384xf32>
    %35 = arith.addf %33, %34 : vector<8x384xf32>
    %cst_21 = arith.constant 5.000000e-01 : f32
    %36 = vector.broadcast %cst_21 : f32 to vector<8x384xf32>
    %37 = arith.mulf %36, %35 : vector<8x384xf32>
    %38 = vector.extract_strided_slice %32 {offsets = [0, 384], sizes = [8, 128], strides = [1, 1]} : vector<8x512xf32> to vector<8x128xf32>
    %39 = vector.extract_strided_slice %37 {offsets = [0, 0], sizes = [8, 128], strides = [1, 1]} : vector<8x384xf32> to vector<8x128xf32>
    %40 = vector.extract_strided_slice %37 {offsets = [0, 128], sizes = [8, 128], strides = [1, 1]} : vector<8x384xf32> to vector<8x128xf32>
    %41 = vector.extract_strided_slice %37 {offsets = [0, 256], sizes = [8, 128], strides = [1, 1]} : vector<8x384xf32> to vector<8x128xf32>
    %42 = arith.mulf %40, %25 : vector<8x128xf32>
    %43 = arith.mulf %39, %38 : vector<8x128xf32>
    %44 = arith.addf %42, %43 : vector<8x128xf32>
    %45 = math.tanh %44 : vector<8x128xf32>
    %46 = arith.mulf %41, %45 : vector<8x128xf32>
    %c16 = arith.constant 16 : index
    %c0_22 = arith.constant 0 : index
    %47 = vector.load %arg7[%c16, %c0_22] : memref<64x512xf32, #tpu.memory_space<vmem>>, vector<8x512xf32>
    %c0_23 = arith.constant 0 : index
    %c0_24 = arith.constant 0 : index
    %48 = vector.load %arg2[%c0_23, %c0_24] : memref<128x512xf32, #tpu.memory_space<vmem>>, vector<128x512xf32>
    %cst_25 = arith.constant dense<0.000000e+00> : vector<8x512xf32>
    %49 = tpu.matmul %46, %48, %cst_25 {dimension_numbers = #tpu.dot_dimension_numbers<[1], [0], [0], [1], [0, 0, 1, 1], [], []>} : vector<8x128xf32>, vector<128x512xf32>, vector<8x512xf32> -> vector<8x512xf32>
    %50 = arith.addf %47, %49 : vector<8x512xf32>
    %51 = math.tanh %50 : vector<8x512xf32>
    %52 = vector.extract_strided_slice %51 {offsets = [0, 0], sizes = [8, 384], strides = [1, 1]} : vector<8x512xf32> to vector<8x384xf32>
    %cst_26 = arith.constant 1.000000e+00 : f32
    %53 = vector.broadcast %cst_26 : f32 to vector<8x384xf32>
    %54 = arith.addf %52, %53 : vector<8x384xf32>
    %cst_27 = arith.constant 5.000000e-01 : f32
    %55 = vector.broadcast %cst_27 : f32 to vector<8x384xf32>
    %56 = arith.mulf %55, %54 : vector<8x384xf32>
    %57 = vector.extract_strided_slice %51 {offsets = [0, 384], sizes = [8, 128], strides = [1, 1]} : vector<8x512xf32> to vector<8x128xf32>
    %58 = vector.extract_strided_slice %56 {offsets = [0, 0], sizes = [8, 128], strides = [1, 1]} : vector<8x384xf32> to vector<8x128xf32>
    %59 = vector.extract_strided_slice %56 {offsets = [0, 128], sizes = [8, 128], strides = [1, 1]} : vector<8x384xf32> to vector<8x128xf32>
    %60 = vector.extract_strided_slice %56 {offsets = [0, 256], sizes = [8, 128], strides = [1, 1]} : vector<8x384xf32> to vector<8x128xf32>
    %61 = arith.mulf %59, %44 : vector<8x128xf32>
    %62 = arith.mulf %58, %57 : vector<8x128xf32>
    %63 = arith.addf %61, %62 : vector<8x128xf32>
    %64 = math.tanh %63 : vector<8x128xf32>
    %65 = arith.mulf %60, %64 : vector<8x128xf32>
    %c24 = arith.constant 24 : index
    %c0_28 = arith.constant 0 : index
    %66 = vector.load %arg7[%c24, %c0_28] : memref<64x512xf32, #tpu.memory_space<vmem>>, vector<8x512xf32>
    %c0_29 = arith.constant 0 : index
    %c0_30 = arith.constant 0 : index
    %67 = vector.load %arg2[%c0_29, %c0_30] : memref<128x512xf32, #tpu.memory_space<vmem>>, vector<128x512xf32>
    %cst_31 = arith.constant dense<0.000000e+00> : vector<8x512xf32>
    %68 = tpu.matmul %65, %67, %cst_31 {dimension_numbers = #tpu.dot_dimension_numbers<[1], [0], [0], [1], [0, 0, 1, 1], [], []>} : vector<8x128xf32>, vector<128x512xf32>, vector<8x512xf32> -> vector<8x512xf32>
    %69 = arith.addf %66, %68 : vector<8x512xf32>
    %70 = math.tanh %69 : vector<8x512xf32>
    %71 = vector.extract_strided_slice %70 {offsets = [0, 0], sizes = [8, 384], strides = [1, 1]} : vector<8x512xf32> to vector<8x384xf32>
    %cst_32 = arith.constant 1.000000e+00 : f32
    %72 = vector.broadcast %cst_32 : f32 to vector<8x384xf32>
    %73 = arith.addf %71, %72 : vector<8x384xf32>
    %cst_33 = arith.constant 5.000000e-01 : f32
    %74 = vector.broadcast %cst_33 : f32 to vector<8x384xf32>
    %75 = arith.mulf %74, %73 : vector<8x384xf32>
    %76 = vector.extract_strided_slice %70 {offsets = [0, 384], sizes = [8, 128], strides = [1, 1]} : vector<8x512xf32> to vector<8x128xf32>
    %77 = vector.extract_strided_slice %75 {offsets = [0, 0], sizes = [8, 128], strides = [1, 1]} : vector<8x384xf32> to vector<8x128xf32>
    %78 = vector.extract_strided_slice %75 {offsets = [0, 128], sizes = [8, 128], strides = [1, 1]} : vector<8x384xf32> to vector<8x128xf32>
    %79 = vector.extract_strided_slice %75 {offsets = [0, 256], sizes = [8, 128], strides = [1, 1]} : vector<8x384xf32> to vector<8x128xf32>
    %80 = arith.mulf %78, %63 : vector<8x128xf32>
    %81 = arith.mulf %77, %76 : vector<8x128xf32>
    %82 = arith.addf %80, %81 : vector<8x128xf32>
    %83 = math.tanh %82 : vector<8x128xf32>
    %84 = arith.mulf %79, %83 : vector<8x128xf32>
    %c32 = arith.constant 32 : index
    %c0_34 = arith.constant 0 : index
    %85 = vector.load %arg7[%c32, %c0_34] : memref<64x512xf32, #tpu.memory_space<vmem>>, vector<8x512xf32>
    %c0_35 = arith.constant 0 : index
    %c0_36 = arith.constant 0 : index
    %86 = vector.load %arg2[%c0_35, %c0_36] : memref<128x512xf32, #tpu.memory_space<vmem>>, vector<128x512xf32>
    %cst_37 = arith.constant dense<0.000000e+00> : vector<8x512xf32>
    %87 = tpu.matmul %84, %86, %cst_37 {dimension_numbers = #tpu.dot_dimension_numbers<[1], [0], [0], [1], [0, 0, 1, 1], [], []>} : vector<8x128xf32>, vector<128x512xf32>, vector<8x512xf32> -> vector<8x512xf32>
    %88 = arith.addf %85, %87 : vector<8x512xf32>
    %89 = math.tanh %88 : vector<8x512xf32>
    %90 = vector.extract_strided_slice %89 {offsets = [0, 0], sizes = [8, 384], strides = [1, 1]} : vector<8x512xf32> to vector<8x384xf32>
    %cst_38 = arith.constant 1.000000e+00 : f32
    %91 = vector.broadcast %cst_38 : f32 to vector<8x384xf32>
    %92 = arith.addf %90, %91 : vector<8x384xf32>
    %cst_39 = arith.constant 5.000000e-01 : f32
    %93 = vector.broadcast %cst_39 : f32 to vector<8x384xf32>
    %94 = arith.mulf %93, %92 : vector<8x384xf32>
    %95 = vector.extract_strided_slice %89 {offsets = [0, 384], sizes = [8, 128], strides = [1, 1]} : vector<8x512xf32> to vector<8x128xf32>
    %96 = vector.extract_strided_slice %94 {offsets = [0, 0], sizes = [8, 128], strides = [1, 1]} : vector<8x384xf32> to vector<8x128xf32>
    %97 = vector.extract_strided_slice %94 {offsets = [0, 128], sizes = [8, 128], strides = [1, 1]} : vector<8x384xf32> to vector<8x128xf32>
    %98 = vector.extract_strided_slice %94 {offsets = [0, 256], sizes = [8, 128], strides = [1, 1]} : vector<8x384xf32> to vector<8x128xf32>
    %99 = arith.mulf %97, %82 : vector<8x128xf32>
    %100 = arith.mulf %96, %95 : vector<8x128xf32>
    %101 = arith.addf %99, %100 : vector<8x128xf32>
    %102 = math.tanh %101 : vector<8x128xf32>
    %103 = arith.mulf %98, %102 : vector<8x128xf32>
    %c40 = arith.constant 40 : index
    %c0_40 = arith.constant 0 : index
    %104 = vector.load %arg7[%c40, %c0_40] : memref<64x512xf32, #tpu.memory_space<vmem>>, vector<8x512xf32>
    %c0_41 = arith.constant 0 : index
    %c0_42 = arith.constant 0 : index
    %105 = vector.load %arg2[%c0_41, %c0_42] : memref<128x512xf32, #tpu.memory_space<vmem>>, vector<128x512xf32>
    %cst_43 = arith.constant dense<0.000000e+00> : vector<8x512xf32>
    %106 = tpu.matmul %103, %105, %cst_43 {dimension_numbers = #tpu.dot_dimension_numbers<[1], [0], [0], [1], [0, 0, 1, 1], [], []>} : vector<8x128xf32>, vector<128x512xf32>, vector<8x512xf32> -> vector<8x512xf32>
    %107 = arith.addf %104, %106 : vector<8x512xf32>
    %108 = math.tanh %107 : vector<8x512xf32>
    %109 = vector.extract_strided_slice %108 {offsets = [0, 0], sizes = [8, 384], strides = [1, 1]} : vector<8x512xf32> to vector<8x384xf32>
    %cst_44 = arith.constant 1.000000e+00 : f32
    %110 = vector.broadcast %cst_44 : f32 to vector<8x384xf32>
    %111 = arith.addf %109, %110 : vector<8x384xf32>
    %cst_45 = arith.constant 5.000000e-01 : f32
    %112 = vector.broadcast %cst_45 : f32 to vector<8x384xf32>
    %113 = arith.mulf %112, %111 : vector<8x384xf32>
    %114 = vector.extract_strided_slice %108 {offsets = [0, 384], sizes = [8, 128], strides = [1, 1]} : vector<8x512xf32> to vector<8x128xf32>
    %115 = vector.extract_strided_slice %113 {offsets = [0, 0], sizes = [8, 128], strides = [1, 1]} : vector<8x384xf32> to vector<8x128xf32>
    %116 = vector.extract_strided_slice %113 {offsets = [0, 128], sizes = [8, 128], strides = [1, 1]} : vector<8x384xf32> to vector<8x128xf32>
    %117 = vector.extract_strided_slice %113 {offsets = [0, 256], sizes = [8, 128], strides = [1, 1]} : vector<8x384xf32> to vector<8x128xf32>
    %118 = arith.mulf %116, %101 : vector<8x128xf32>
    %119 = arith.mulf %115, %114 : vector<8x128xf32>
    %120 = arith.addf %118, %119 : vector<8x128xf32>
    %121 = math.tanh %120 : vector<8x128xf32>
    %122 = arith.mulf %117, %121 : vector<8x128xf32>
    %c48 = arith.constant 48 : index
    %c0_46 = arith.constant 0 : index
    %123 = vector.load %arg7[%c48, %c0_46] : memref<64x512xf32, #tpu.memory_space<vmem>>, vector<8x512xf32>
    %c0_47 = arith.constant 0 : index
    %c0_48 = arith.constant 0 : index
    %124 = vector.load %arg2[%c0_47, %c0_48] : memref<128x512xf32, #tpu.memory_space<vmem>>, vector<128x512xf32>
    %cst_49 = arith.constant dense<0.000000e+00> : vector<8x512xf32>
    %125 = tpu.matmul %122, %124, %cst_49 {dimension_numbers = #tpu.dot_dimension_numbers<[1], [0], [0], [1], [0, 0, 1, 1], [], []>} : vector<8x128xf32>, vector<128x512xf32>, vector<8x512xf32> -> vector<8x512xf32>
    %126 = arith.addf %123, %125 : vector<8x512xf32>
    %127 = math.tanh %126 : vector<8x512xf32>
    %128 = vector.extract_strided_slice %127 {offsets = [0, 0], sizes = [8, 384], strides = [1, 1]} : vector<8x512xf32> to vector<8x384xf32>
    %cst_50 = arith.constant 1.000000e+00 : f32
    %129 = vector.broadcast %cst_50 : f32 to vector<8x384xf32>
    %130 = arith.addf %128, %129 : vector<8x384xf32>
    %cst_51 = arith.constant 5.000000e-01 : f32
    %131 = vector.broadcast %cst_51 : f32 to vector<8x384xf32>
    %132 = arith.mulf %131, %130 : vector<8x384xf32>
    %133 = vector.extract_strided_slice %127 {offsets = [0, 384], sizes = [8, 128], strides = [1, 1]} : vector<8x512xf32> to vector<8x128xf32>
    %134 = vector.extract_strided_slice %132 {offsets = [0, 0], sizes = [8, 128], strides = [1, 1]} : vector<8x384xf32> to vector<8x128xf32>
    %135 = vector.extract_strided_slice %132 {offsets = [0, 128], sizes = [8, 128], strides = [1, 1]} : vector<8x384xf32> to vector<8x128xf32>
    %136 = vector.extract_strided_slice %132 {offsets = [0, 256], sizes = [8, 128], strides = [1, 1]} : vector<8x384xf32> to vector<8x128xf32>
    %137 = arith.mulf %135, %120 : vector<8x128xf32>
    %138 = arith.mulf %134, %133 : vector<8x128xf32>
    %139 = arith.addf %137, %138 : vector<8x128xf32>
    %140 = math.tanh %139 : vector<8x128xf32>
    %141 = arith.mulf %136, %140 : vector<8x128xf32>
    %c56 = arith.constant 56 : index
    %c0_52 = arith.constant 0 : index
    %142 = vector.load %arg7[%c56, %c0_52] : memref<64x512xf32, #tpu.memory_space<vmem>>, vector<8x512xf32>
    %c0_53 = arith.constant 0 : index
    %c0_54 = arith.constant 0 : index
    %143 = vector.load %arg2[%c0_53, %c0_54] : memref<128x512xf32, #tpu.memory_space<vmem>>, vector<128x512xf32>
    %cst_55 = arith.constant dense<0.000000e+00> : vector<8x512xf32>
    %144 = tpu.matmul %141, %143, %cst_55 {dimension_numbers = #tpu.dot_dimension_numbers<[1], [0], [0], [1], [0, 0, 1, 1], [], []>} : vector<8x128xf32>, vector<128x512xf32>, vector<8x512xf32> -> vector<8x512xf32>
    %145 = arith.addf %142, %144 : vector<8x512xf32>
    %146 = math.tanh %145 : vector<8x512xf32>
    %147 = vector.extract_strided_slice %146 {offsets = [0, 0], sizes = [8, 384], strides = [1, 1]} : vector<8x512xf32> to vector<8x384xf32>
    %cst_56 = arith.constant 1.000000e+00 : f32
    %148 = vector.broadcast %cst_56 : f32 to vector<8x384xf32>
    %149 = arith.addf %147, %148 : vector<8x384xf32>
    %cst_57 = arith.constant 5.000000e-01 : f32
    %150 = vector.broadcast %cst_57 : f32 to vector<8x384xf32>
    %151 = arith.mulf %150, %149 : vector<8x384xf32>
    %152 = vector.extract_strided_slice %146 {offsets = [0, 384], sizes = [8, 128], strides = [1, 1]} : vector<8x512xf32> to vector<8x128xf32>
    %153 = vector.extract_strided_slice %151 {offsets = [0, 0], sizes = [8, 128], strides = [1, 1]} : vector<8x384xf32> to vector<8x128xf32>
    %154 = vector.extract_strided_slice %151 {offsets = [0, 128], sizes = [8, 128], strides = [1, 1]} : vector<8x384xf32> to vector<8x128xf32>
    %155 = vector.extract_strided_slice %151 {offsets = [0, 256], sizes = [8, 128], strides = [1, 1]} : vector<8x384xf32> to vector<8x128xf32>
    %156 = arith.mulf %154, %139 : vector<8x128xf32>
    %157 = arith.mulf %153, %152 : vector<8x128xf32>
    %158 = arith.addf %156, %157 : vector<8x128xf32>
    %159 = math.tanh %158 : vector<8x128xf32>
    %160 = arith.mulf %155, %159 : vector<8x128xf32>
    %c0_58 = arith.constant 0 : index
    %c0_59 = arith.constant 0 : index
    %161 = vector.load %arg4[%c0_58, %c0_59] : memref<128x1xf32, #tpu.memory_space<vmem>>, vector<128x1xf32>
    %cst_60 = arith.constant dense<0.000000e+00> : vector<8x1xf32>
    %162 = tpu.matmul %160, %161, %cst_60 {dimension_numbers = #tpu.dot_dimension_numbers<[1], [0], [0], [1], [0, 0, 1, 1], [], []>} : vector<8x128xf32>, vector<128x1xf32>, vector<8x1xf32> -> vector<8x1xf32>
    %c0_61 = arith.constant 0 : index
    %c0_62 = arith.constant 0 : index
    %163 = vector.load %arg5[%c0_61, %c0_62] : memref<1x1xf32, #tpu.memory_space<vmem>>, vector<1x1xf32>
    %164 = vector.broadcast %163 : vector<1x1xf32> to vector<8x1xf32>
    %165 = arith.addf %162, %164 : vector<8x1xf32>
    %c0_63 = arith.constant 0 : index
    %c0_64 = arith.constant 0 : index
    %166 = vector.load %arg6[%c0_63, %c0_64] : memref<8x1xf32, #tpu.memory_space<vmem>>, vector<8x1xf32>
    tpu.vector_store %arg6[%c0_63, %c0_64], %165 {strides = array<i32>} : memref<8x1xf32, #tpu.memory_space<vmem>>, vector<8x1xf32>,
    return
  }
}

</mosaic_0001>

<bundles_post_ra>
// kernel: tpu_custom_call.1
= control target key start
LH: loop header
LB: loop body
LE: loop exit
PB: predicated region body
PF: predicated region fallthrough
CT: control target
= control target key end

     0   :  { %s3196_s0 = inlined_call_operand.vmem [shape: f32[64,4], index: 0, kind: input, shape index: {}]   ;;  %s3197_s1 = inlined_call_operand.vmem [shape: f32[4,512], index: 1, kind: input, shape index: {}]   ;;  %s3198_s2 = inlined_call_operand.hbm [shape: f32[128,512], index: 2, kind: input, shape index: {}]   ;;  %s3199_s3 = inlined_call_operand.vmem [shape: f32[1,512], index: 3, kind: input, shape index: {}]   ;;  %s3200_s4 = inlined_call_operand.vmem [shape: f32[128,1], index: 4, kind: input, shape index: {}]   ;;  %s3201_s5 = inlined_call_operand.<no memory space> [shape: f32[1,1], index: 5, kind: input, shape index: {}]   ;;  %s3202_s6 = inlined_call_operand.vmem [shape: f32[8,1], index: 6, kind: output, shape index: {}]  }
   0x1   :  { %v11_v0 = vstv %s3201_s5 }
   0x2   :  { %12 = vst [vmem:[#allocation3] sm:$0x1] %v11_v0 }
   0x3   :  { %13 = vsyncpa [#allocation5], 0  ;;  %s2097_s23 = smov [#allocation4]  }
   0x4   :  { %s23_s24 = sshll.u32 %s2097_s23, 4  ;;  %s24_s24 = int_to_ptr.vmem [resolvable:$true] %s23_s24 }
   0x5   :  { %s2083_s25 = scalar_lea.vmem %s24_s24, 8192  ;;  %p2088_p1 = scmp.lt.s32.totalorder %s24_s24, %s24_s24 }
   0x6   :  { %p2084_p0 = scmp.ne.s32.totalorder %s24_s24, %s2083_s25  ;;  %p2089_p2 = scmp.lt.s32.totalorder %s2083_s25, %s2083_s25 }
   0x8   :  { %p2090_p3 = por %p2089_p2, %p2088_p1 }
   0xa   :  { %p2091_p4 = pnand %p2090_p3, %p2084_p0 }
   0xc   :  { %2094 = shalt.err (!%p2091_p4)
}
   0xd   :  { %s2098_s26 = smov 512   ;;  %s2099_s27 = smov 32  }
   0xe   :  { %29 = dma.hbm_to_vmem [thread:$0]  %s3198_s2, 8192, %s24_s24, [#allocation5], %s2098_s26, %s2098_s26, %s2099_s27  }
   0xf   :  { %2095 = dma.done.wait [#allocation5], 8192  }
  0x10   :  { %2096 = vsyncadd [#allocation5], 4294959104  ;;  %v3203_v1 = vmov 0.0   ;;  %v47_v2 = vld [vmem:[%s3197_s1] sm:$0xff]  ;;  %vm100_vm0 = vcmask 1043456   ;;  %v48_v3 = vld [vmem:[%s3197_s1 + $0x8] sm:$0xff] }
  0x11   :  { %173 = vmatprep.mubr.f32.mxu0 %v3203_v1  ;;  %286 = vmatprep.mubr.f32.mxu1 %v3203_v1  ;;  %v73_v4 = vcombine.high %v47_v2, %v47_v2  ;;  %v74_v5 = vcombine.high %v48_v3, %v48_v3  ;;  %v39_v6 = vld [vmem:[%s3196_s0] sm:$0xff]  ;;  %vm75_vm1 = vcmask 31744   ;;  %v2154_v7 = vld [vmem:[#allocation4 + $0x1e8] sm:$0xff]  ;;  %v2160_v10 = vld [vmem:[#allocation4 + $0x1f0] sm:$0xff]  ;;  %vm2101_vm2 = vmmov 0  }
  0x12   :  { %3294 = vst [vmem:[#allocation7_spill] sm:$0xff] %v2154_v7  ;;  %v2156_v8 = vld [vmem:[#allocation4 + $0x1f8] sm:$0xff]  ;;  %v2158_v9 = vld [vmem:[#allocation4 + $0x1e0] sm:$0xff]  ;;  %v2164_v11 = vld [vmem:[#allocation4 + $0x1c8] sm:$0xff]  ;;  %vm1844_vm3 = vcmask 7168  }
  0x13   :  { %1851 = vmatprep.subr.msk.mxu0 %vm100_vm0, %v73_v4  ;;  %1861 = vmatprep.subr.msk.mxu1 %vm100_vm0, %v74_v5  ;;  %3295 = vst [vmem:[#allocation8_spill] sm:$0xff] %v2156_v8  ;;  %v2166_v12 = vld [vmem:[#allocation4 + $0x1d8] sm:$0xff]  ;;  %v2172_v13 = vld [vmem:[#allocation4 + $0x1c0] sm:$0xff]  ;;  %v2174_v14 = vld [vmem:[#allocation4 + $0x1d0] sm:$0xff] }
  0x14   :  { %1852 = vmatpush1.msk.msra.mxu0 %vm100_vm0, %v47_v2  ;;  %1862 = vmatpush1.msk.msra.mxu1 %vm100_vm0, %v48_v3  ;;  %v40_v15 = vld [vmem:[%s3196_s0 + $0x8] sm:$0xff]  ;;  %v2185_v17 = vld [vmem:[#allocation4 + $0x1b8] sm:$0xff]  ;;  %v2191_v19 = vld [vmem:[#allocation4 + $0x1b0] sm:$0xff] }
  0x15   :  { %1853 = vmatmul.mubr.msk.f32.vlgmr.msra.gmra.mxu0 %vm75_vm1, %v39_v6  ;;  %1863 = vmatmul.mubr.msk.f32.vlgmr.msra.gmra.mxu1 %vm75_vm1, %v39_v6  ;;  %v2183_v16 = vld [vmem:[#allocation4 + $0x1a8] sm:$0xff]  ;;  %v2189_v18 = vld [vmem:[#allocation4 + $0x1a0] sm:$0xff]  ;;  %v2197_v21 = vld [vmem:[#allocation4 + $0x198] sm:$0xff] }
  0x16   :  { %435 = vmatprep.subr.mxu0 %v2154_v7  ;;  %506 = vmatprep.subr.mxu1 %v2156_v8  ;;  %v2195_v20 = vld [vmem:[#allocation4 + $0x188] sm:$0xff]  ;;  %v2203_v22 = vld [vmem:[#allocation4 + $0x180] sm:$0xff]  ;;  %v2205_v23 = vld [vmem:[#allocation4 + $0x190] sm:$0xff] }
  0x17   :  { %436 = vmatpush1.msra.mxu0 %v2158_v9  ;;  %507 = vmatpush1.msra.mxu1 %v2160_v10  ;;  %v41_v24 = vld [vmem:[%s3196_s0 + $0x10] sm:$0xff]  ;;  %v2216_v26 = vld [vmem:[#allocation4 + $0x178] sm:$0xff]  ;;  %v2220_v27 = vld [vmem:[#allocation4 + $0x160] sm:$0xff] }
  0x18   :  { %437 = vmatprep.subr.mxu0 %v2164_v11  ;;  %508 = vmatprep.subr.mxu1 %v2166_v12  ;;  %v2214_v25 = vld [vmem:[#allocation4 + $0x168] sm:$0xff]  ;;  %v2222_v28 = vld [vmem:[#allocation4 + $0x170] sm:$0xff]  ;;  %v2228_v30 = vld [vmem:[#allocation4 + $0x158] sm:$0xff] }
  0x19   :  { %179 = vmatprep.mubr.f32.mxu0 %v3203_v1  ;;  %292 = vmatprep.mubr.f32.mxu1 %v3203_v1  ;;  %v2226_v29 = vld [vmem:[#allocation4 + $0x148] sm:$0xff]  ;;  %v2234_v31 = vld [vmem:[#allocation4 + $0x140] sm:$0xff]  ;;  %v2236_v32 = vld [vmem:[#allocation4 + $0x150] sm:$0xff] }
  0x1a   :  { %438 = vmatpush1.msra.mxu0 %v2172_v13  ;;  %509 = vmatpush1.msra.mxu1 %v2174_v14  ;;  %v42_v33 = vld [vmem:[%s3196_s0 + $0x18] sm:$0xff]  ;;  %v2245_v34 = vld [vmem:[#allocation4 + $0x128] sm:$0xff]  ;;  %v2251_v36 = vld [vmem:[#allocation4 + $0x120] sm:$0xff] }
  0x1b   :  { %1854 = vmatmul.mubr.msk.f32.gmra.mxu0 %vm75_vm1, %v40_v15  ;;  %1864 = vmatmul.mubr.msk.f32.gmra.mxu1 %vm75_vm1, %v40_v15  ;;  %v2247_v35 = vld [vmem:[#allocation4 + $0x138] sm:$0xff]  ;;  %v2253_v37 = vld [vmem:[#allocation4 + $0x130] sm:$0xff]  ;;  %v2257_v38 = vld [vmem:[#allocation4 + $0x108] sm:$0xff] }
  0x1c   :  { %439 = vmatprep.subr.mxu0 %v2183_v16  ;;  %510 = vmatprep.subr.mxu1 %v2185_v17  ;;  %v2259_v39 = vld [vmem:[#allocation4 + $0x118] sm:$0xff]  ;;  %v2265_v40 = vld [vmem:[#allocation4 + $0x100] sm:$0xff]  ;;  %v2267_v41 = vld [vmem:[#allocation4 + $0x110] sm:$0xff] }
  0x1d   :  { %440 = vmatpush1.msra.mxu0 %v2189_v18  ;;  %511 = vmatpush1.msra.mxu1 %v2191_v19  ;;  %v43_v42 = vld [vmem:[%s3196_s0 + $0x20] sm:$0xff]  ;;  %v2276_v43 = vld [vmem:[#allocation4 + $0xe8] sm:$0xff]  ;;  %v2284_v46 = vld [vmem:[#allocation4 + $0xf0] sm:$0xff] }
  0x1e   :  { %441 = vmatprep.subr.mxu0 %v2195_v20  ;;  %512 = vmatprep.subr.mxu1 %v2197_v21  ;;  %v2278_v44 = vld [vmem:[#allocation4 + $0xf8] sm:$0xff]  ;;  %v2282_v45 = vld [vmem:[#allocation4 + $0xe0] sm:$0xff]  ;;  %v2288_v47 = vld [vmem:[#allocation4 + $0xc8] sm:$0xff] }
  0x1f   :  { %185 = vmatprep.mubr.f32.mxu0 %v3203_v1  ;;  %298 = vmatprep.mubr.f32.mxu1 %v3203_v1  ;;  %v2290_v48 = vld [vmem:[#allocation4 + $0xd8] sm:$0xff]  ;;  %v2296_v49 = vld [vmem:[#allocation4 + $0xc0] sm:$0xff]  ;;  %v2298_v50 = vld [vmem:[#allocation4 + $0xd0] sm:$0xff] }
  0x20   :  { %442 = vmatpush1.msra.mxu0 %v2203_v22  ;;  %513 = vmatpush1.msra.mxu1 %v2205_v23  ;;  %v44_v51 = vld [vmem:[%s3196_s0 + $0x28] sm:$0xff]  ;;  %v2309_v53 = vld [vmem:[#allocation4 + $0xb8] sm:$0xff]  ;;  %v2315_v55 = vld [vmem:[#allocation4 + $0xb0] sm:$0xff] }
  0x21   :  { %1855 = vmatmul.mubr.msk.f32.gmra.mxu0 %vm75_vm1, %v41_v24  ;;  %1865 = vmatmul.mubr.msk.f32.gmra.mxu1 %vm75_vm1, %v41_v24  ;;  %v2307_v52 = vld [vmem:[#allocation4 + $0xa8] sm:$0xff]  ;;  %v2313_v54 = vld [vmem:[#allocation4 + $0xa0] sm:$0xff]  ;;  %3296 = vst [vmem:[#allocation9_spill] sm:$0xff] %v2315_v55  ;;  %v2321_v57 = vld [vmem:[#allocation4 + $0x98] sm:$0xff] }
  0x22   :  { %443 = vmatprep.subr.mxu0 %v2214_v25  ;;  %514 = vmatprep.subr.mxu1 %v2216_v26  ;;  %v2319_v56 = vld [vmem:[#allocation4 + $0x88] sm:$0xff]  ;;  %3298 = vst [vmem:[#allocation11_spill] sm:$0xff] %v2321_v57  ;;  %v2327_v58 = vld [vmem:[#allocation4 + $0x80] sm:$0xff]  ;;  %v2329_v59 = vld [vmem:[#allocation4 + $0x90] sm:$0xff] }
  0x23   :  { %444 = vmatpush1.msra.mxu0 %v2220_v27  ;;  %515 = vmatpush1.msra.mxu1 %v2222_v28  ;;  %3297 = vst [vmem:[#allocation10_spill] sm:$0xff] %v2319_v56  ;;  %3299 = vst [vmem:[#allocation12_spill] sm:$0xff] %v2327_v58  ;;  %v45_v60 = vld [vmem:[%s3196_s0 + $0x30] sm:$0xff]  ;;  %v2340_v62 = vld [vmem:[#allocation4 + $0x78] sm:$0xff] }
  0x24   :  { %445 = vmatprep.subr.mxu0 %v2226_v29  ;;  %516 = vmatprep.subr.mxu1 %v2228_v30  ;;  %3300 = vst [vmem:[#allocation13_spill] sm:$0xff] %v2329_v59  ;;  %v2338_v61 = vld [vmem:[#allocation4 + $0x68] sm:$0xff]  ;;  %3302 = vst [vmem:[#allocation15_spill] sm:$0xff] %v2340_v62  ;;  %v2344_v63 = vld [vmem:[#allocation4 + $0x60] sm:$0xff] }
  0x25   :  { %191 = vmatprep.mubr.f32.mxu0 %v3203_v1  ;;  %304 = vmatprep.mubr.f32.mxu1 %v3203_v1  ;;  %3301 = vst [vmem:[#allocation14_spill] sm:$0xff] %v2338_v61  ;;  %3303 = vst [vmem:[#allocation16_spill] sm:$0xff] %v2344_v63  ;;  %v2346_v0 = vld [vmem:[#allocation4 + $0x70] sm:$0xff]  ;;  %v2350_v2 = vld [vmem:[#allocation4 + $0x48] sm:$0xff] }
  0x26   :  { %446 = vmatpush1.msra.mxu0 %v2234_v31  ;;  %517 = vmatpush1.msra.mxu1 %v2236_v32  ;;  %3304 = vst [vmem:[#allocation17_spill] sm:$0xff] %v2346_v0  ;;  %3305 = vst [vmem:[#allocation18_spill] sm:$0xff] %v2350_v2  ;;  %v2352_v3 = vld [vmem:[#allocation4 + $0x58] sm:$0xff]  ;;  %v2358_v4 = vld [vmem:[#allocation4 + $0x40] sm:$0xff] }
  0x27   :  { %1856 = vmatmul.mubr.msk.f32.gmra.mxu0 %vm75_vm1, %v42_v33  ;;  %1866 = vmatmul.mubr.msk.f32.gmra.mxu1 %vm75_vm1, %v42_v33  ;;  %3306 = vst [vmem:[#allocation19_spill] sm:$0xff] %v2352_v3  ;;  %3307 = vst [vmem:[#allocation20_spill] sm:$0xff] %v2358_v4  ;;  %v2360_v5 = vld [vmem:[#allocation4 + $0x50] sm:$0xff]  ;;  %v2369_v15 = vld [vmem:[#allocation4 + $0x28] sm:$0xff] }
  0x28   :  { %447 = vmatprep.subr.mxu0 %v2245_v34  ;;  %518 = vmatprep.subr.mxu1 %v2247_v35  ;;  %3308 = vst [vmem:[#allocation21_spill] sm:$0xff] %v2360_v5  ;;  %v46_v6 = vld [vmem:[%s3196_s0 + $0x38] sm:$0xff]  ;;  %3309 = vst [vmem:[#allocation22_spill] sm:$0xff] %v2369_v15  ;;  %v2375_v33 = vld [vmem:[#allocation4 + $0x20] sm:$0xff] }
  0x29   :  { %448 = vmatpush1.msra.mxu0 %v2251_v36  ;;  %519 = vmatpush1.msra.mxu1 %v2253_v37  ;;  %v2371_v24 = vld [vmem:[#allocation4 + $0x38] sm:$0xff]  ;;  %3311 = vst [vmem:[#allocation24_spill] sm:$0xff] %v2375_v33 }
  0x2a   :  { %449 = vmatprep.subr.mxu0 %v2257_v38  ;;  %520 = vmatprep.subr.mxu1 %v2259_v39  ;;  %3310 = vst [vmem:[#allocation23_spill] sm:$0xff] %v2371_v24 }
  0x2b   :  { %197 = vmatprep.mubr.f32.mxu0 %v3203_v1  ;;  %310 = vmatprep.mubr.f32.mxu1 %v3203_v1 }
  0x2c   :  { %450 = vmatpush1.msra.mxu0 %v2265_v40  ;;  %521 = vmatpush1.msra.mxu1 %v2267_v41 }
  0x2d   :  { %1857 = vmatmul.mubr.msk.f32.gmra.mxu0 %vm75_vm1, %v43_v42  ;;  %1867 = vmatmul.mubr.msk.f32.gmra.mxu1 %vm75_vm1, %v43_v42  ;;  %v2377_v42 = vld [vmem:[#allocation4 + $0x30] sm:$0xff] }
  0x2e   :  { %451 = vmatprep.subr.mxu0 %v2276_v43  ;;  %522 = vmatprep.subr.mxu1 %v2278_v44  ;;  %3312 = vst [vmem:[#allocation25_spill] sm:$0xff] %v2377_v42 }
  0x2f   :  { %452 = vmatpush1.msra.mxu0 %v2282_v45  ;;  %523 = vmatpush1.msra.mxu1 %v2284_v46 }
  0x30   :  { %453 = vmatprep.subr.mxu0 %v2288_v47  ;;  %524 = vmatprep.subr.mxu1 %v2290_v48 }
  0x31   :  { %203 = vmatprep.mubr.f32.mxu0 %v3203_v1  ;;  %316 = vmatprep.mubr.f32.mxu1 %v3203_v1 }
  0x32   :  { %454 = vmatpush1.msra.mxu0 %v2296_v49  ;;  %525 = vmatpush1.msra.mxu1 %v2298_v50 }
  0x33   :  { %1858 = vmatmul.mubr.msk.f32.gmra.mxu0 %vm75_vm1, %v44_v51  ;;  %1868 = vmatmul.mubr.msk.f32.gmra.mxu1 %vm75_vm1, %v44_v51  ;;  %v2381_v51 = vld [vmem:[#allocation4 + $0x8] sm:$0xff] }
  0x34   :  { %455 = vmatprep.subr.mxu0 %v2307_v52  ;;  %526 = vmatprep.subr.mxu1 %v2309_v53  ;;  %3313 = vst [vmem:[#allocation26_spill] sm:$0xff] %v2381_v51 }
  0x35   :  { %456 = vmatpush1.msra.mxu0 %v2313_v54  ;;  %527 = vmatpush1.msra.mxu1 %v2315_v55 }
  0x36   :  { %457 = vmatprep.subr.mxu0 %v2319_v56  ;;  %528 = vmatprep.subr.mxu1 %v2321_v57 }
  0x37   :  { %209 = vmatprep.mubr.f32.mxu0 %v3203_v1  ;;  %322 = vmatprep.mubr.f32.mxu1 %v3203_v1 }
  0x38   :  { %458 = vmatpush1.msra.mxu0 %v2327_v58  ;;  %529 = vmatpush1.msra.mxu1 %v2329_v59 }
  0x39   :  { %1859 = vmatmul.mubr.msk.f32.gmra.mxu0 %vm75_vm1, %v45_v60  ;;  %1869 = vmatmul.mubr.msk.f32.gmra.mxu1 %vm75_vm1, %v45_v60  ;;  %v2383_v60 = vld [vmem:[#allocation4 + $0x18] sm:$0xff] }
  0x3a   :  { %459 = vmatprep.subr.mxu0 %v2338_v61  ;;  %530 = vmatprep.subr.mxu1 %v2340_v62  ;;  %3314 = vst [vmem:[#allocation27_spill] sm:$0xff] %v2383_v60 }
  0x3b   :  { %460 = vmatpush1.msra.mxu0 %v2344_v63  ;;  %531 = vmatpush1.msra.mxu1 %v2346_v0 }
  0x3c   :  { %461 = vmatprep.subr.mxu0 %v2350_v2  ;;  %532 = vmatprep.subr.mxu1 %v2352_v3 }
  0x3d   :  { %215 = vmatprep.mubr.f32.mxu0 %v3203_v1  ;;  %328 = vmatprep.mubr.f32.mxu1 %v3203_v1  ;;  %v2387_v1 = vld [vmem:[#allocation4] sm:$0xff] }
  0x3e   :  { %462 = vmatpush1.msra.mxu0 %v2358_v4  ;;  %533 = vmatpush1.msra.mxu1 %v2360_v5  ;;  %3315 = vst [vmem:[#allocation28_spill] sm:$0xff] %v2387_v1  ;;  %v2391_v5 = vld [vmem:[#allocation4 + $0x10] sm:$0xff] }
  0x3f   :  { %1860 = vmatmul.mubr.msk.f32.gmra.mxu0 %vm75_vm1, %v46_v6  ;;  %1870 = vmatmul.mubr.msk.f32.gmra.mxu1 %vm75_vm1, %v46_v6  ;;  %3316 = vst [vmem:[#allocation29_spill] sm:$0xff] %v2391_v5  ;;  %v3317_v6 = vmov 0.0  }
  0x40   :  { %463 = vmatprep.subr.mxu0 %v2369_v15  ;;  %534 = vmatprep.subr.mxu1 %v2371_v24 }
  0x41   :  { %464 = vmatpush1.msra.mxu0 %v2375_v33  ;;  %535 = vmatpush1.msra.mxu1 %v2377_v42 }
  0x42   :  { %465 = vmatprep.subr.mxu0 %v2381_v51  ;;  %536 = vmatprep.subr.mxu1 %v2383_v60 }
  0x43   :  { %466 = vmatpush1.msra.mxu0 %v2387_v1  ;;  %499 = vmatprep.mubr.f32.mxu0 %v3317_v6 }
  0x44   :  { %537 = vmatpush1.msra.mxu1 %v2391_v5  ;;  %570 = vmatprep.mubr.f32.mxu1 %v3317_v6 }
  0x45   :  { %500 = vmatmul.mubr.f32.vlgmr.msra.gmra.mxu0 %v3317_v6  ;;  %571 = vmatmul.mubr.f32.vlgmr.msra.gmra.mxu1 %v3317_v6 }
  0x46   :  { %600 = vmatprep.subr.mxu0 %v2154_v7  ;;  %671 = vmatprep.subr.mxu1 %v2156_v8 }
  0x47   :  { %601 = vmatpush1.msra.mxu0 %v2158_v9  ;;  %672 = vmatpush1.msra.mxu1 %v2160_v10 }
  0x48   :  { %602 = vmatprep.subr.mxu0 %v2164_v11  ;;  %673 = vmatprep.subr.mxu1 %v2166_v12 }
  0x49   :  { %603 = vmatpush1.msra.mxu0 %v2172_v13  ;;  %674 = vmatpush1.msra.mxu1 %v2174_v14 }
  0x4a   :  { %604 = vmatprep.subr.mxu0 %v2183_v16  ;;  %675 = vmatprep.subr.mxu1 %v2185_v17 }
  0x4b   :  { %605 = vmatpush1.msra.mxu0 %v2189_v18  ;;  %676 = vmatpush1.msra.mxu1 %v2191_v19 }
  0x4c   :  { %606 = vmatprep.subr.mxu0 %v2195_v20  ;;  %677 = vmatprep.subr.mxu1 %v2197_v21 }
  0x4d   :  { %607 = vmatpush1.msra.mxu0 %v2203_v22  ;;  %678 = vmatpush1.msra.mxu1 %v2205_v23 }
  0x4e   :  { %608 = vmatprep.subr.mxu0 %v2214_v25  ;;  %679 = vmatprep.subr.mxu1 %v2216_v26 }
  0x4f   :  { %609 = vmatpush1.msra.mxu0 %v2220_v27  ;;  %680 = vmatpush1.msra.mxu1 %v2222_v28 }
  0x50   :  { %610 = vmatprep.subr.mxu0 %v2226_v29  ;;  %681 = vmatprep.subr.mxu1 %v2228_v30 }
  0x51   :  { %611 = vmatpush1.msra.mxu0 %v2234_v31  ;;  %682 = vmatpush1.msra.mxu1 %v2236_v32 }
  0x52   :  { %612 = vmatprep.subr.mxu0 %v2245_v34  ;;  %683 = vmatprep.subr.mxu1 %v2247_v35 }
  0x53   :  { %613 = vmatpush1.msra.mxu0 %v2251_v36  ;;  %684 = vmatpush1.msra.mxu1 %v2253_v37 }
  0x54   :  { %614 = vmatprep.subr.mxu0 %v2257_v38  ;;  %685 = vmatprep.subr.mxu1 %v2259_v39 }
  0x55   :  { %615 = vmatpush1.msra.mxu0 %v2265_v40  ;;  %686 = vmatpush1.msra.mxu1 %v2267_v41 }
  0x56   :  { %616 = vmatprep.subr.mxu0 %v2276_v43  ;;  %687 = vmatprep.subr.mxu1 %v2278_v44 }
  0x57   :  { %617 = vmatpush1.msra.mxu0 %v2282_v45  ;;  %688 = vmatpush1.msra.mxu1 %v2284_v46 }
  0x58   :  { %618 = vmatprep.subr.mxu0 %v2288_v47  ;;  %689 = vmatprep.subr.mxu1 %v2290_v48 }
  0x59   :  { %619 = vmatpush1.msra.mxu0 %v2296_v49  ;;  %690 = vmatpush1.msra.mxu1 %v2298_v50 }
  0x5a   :  { %620 = vmatprep.subr.mxu0 %v2307_v52  ;;  %691 = vmatprep.subr.mxu1 %v2309_v53 }
  0x5b   :  { %621 = vmatpush1.msra.mxu0 %v2313_v54  ;;  %692 = vmatpush1.msra.mxu1 %v2315_v55 }
  0x5c   :  { %622 = vmatprep.subr.mxu0 %v2319_v56  ;;  %693 = vmatprep.subr.mxu1 %v2321_v57  ;;  %v3318_v56 = vld [vmem:[#allocation21_spill] sm:$0xff] }
  0x5d   :  { %623 = vmatpush1.msra.mxu0 %v2327_v58  ;;  %694 = vmatpush1.msra.mxu1 %v2329_v59 }
  0x5e   :  { %624 = vmatprep.subr.mxu0 %v2338_v61  ;;  %695 = vmatprep.subr.mxu1 %v2340_v62 }
  0x5f   :  { %625 = vmatpush1.msra.mxu0 %v2344_v63  ;;  %696 = vmatpush1.msra.mxu1 %v2346_v0 }
  0x60   :  { %626 = vmatprep.subr.mxu0 %v2350_v2  ;;  %697 = vmatprep.subr.mxu1 %v2352_v3 }
  0x61   :  { %627 = vmatpush1.msra.mxu0 %v2358_v4  ;;  %698 = vmatpush1.msra.mxu1 %v3318_v56 }
  0x62   :  { %628 = vmatprep.subr.mxu0 %v2369_v15  ;;  %699 = vmatprep.subr.mxu1 %v2371_v24  ;;  %v51_v24 = vlaneseq }
  0x63   :  { %629 = vmatpush1.msra.mxu0 %v2375_v33  ;;  %700 = vmatpush1.msra.mxu1 %v2377_v42 }
  0x64   :  { %630 = vmatprep.subr.mxu0 %v2381_v51  ;;  %701 = vmatprep.subr.mxu1 %v2383_v60  ;;  %v52_v33 = vshrl.u32 %v51_v24, 7 }
  0x65   :  { %631 = vmatpush1.msra.mxu0 %v2387_v1  ;;  %664 = vmatprep.mubr.f32.mxu0 %v3317_v6  ;;  %v49_v1 = vld [vmem:[%s3199_s3] sm:$0xf] }
  0x66   :  { %702 = vmatpush1.msra.mxu1 %v2391_v5  ;;  %735 = vmatprep.mubr.f32.mxu1 %v3317_v6  ;;  %v53_v51 = vsub.s32 0, %v52_v33  ;;  %v61_v60 = vsub.s32 2, %v52_v33  ;;  %v57_v6 = vsub.s32 1, %v52_v33 }
  0x67   :  { %765 = vmatprep.subr.mxu0 %v2154_v7  ;;  %836 = vmatprep.subr.mxu1 %v2156_v8  ;;  %v65_v7 = vsub.s32 3, %v52_v33 }
  0x68   :  { %v54_v4 = vrot.slane %v49_v1, %v53_v51  ;;  %v2480_v8 = vrot.slane %v49_v1, %v61_v60  ;;  %v58_v2 = vrot.slane %v49_v1, %v57_v6 }
  0x69   :  { %v66_v0 = vrot.slane %v49_v1, %v65_v7 }
  0xd5   :  { %v2469_v15 = vpop.f32.mrf.mxu0  ;;  %v2471_v42 = vpop.f32.mrf.mxu1 }
  0xd7   :  { %v2476_v56 = vpop.f32.mrf.mxu0  ;;  %v2478_v5 = vpop.f32.mrf.mxu1 }
  0xdb   :  { %v181_v24 = vpop.f32.mrf.mxu0  ;;  %v294_v3 = vpop.f32.mrf.mxu1 }
  0xdc   :  { %v2482_v63 = vadd.f32 %v181_v24, %v54_v4  ;;  %v2485_v62 = vadd.f32 %v294_v3, %v2480_v8 }
  0xdd   :  { %v183_v61 = vpop.f32.mrf.mxu0  ;;  %v296_v59 = vpop.f32.mrf.mxu1 }
  0xde   :  { %3319 = vst [vmem:[#allocation30_spill] sm:$0xff] %v2482_v63  ;;  %3320 = vst [vmem:[#allocation31_spill] sm:$0xff] %v2485_v62  ;;  %v2487_v58 = vadd.f32 %v183_v61, %v58_v2  ;;  %v2489_v57 = vadd.f32 %v296_v59, %v66_v0 }
  0xe0   :  { %3321 = vst [vmem:[#allocation32_spill] sm:$0xff] %v2487_v58  ;;  %3322 = vst [vmem:[#allocation33_spill] sm:$0xff] %v2489_v57 }
  0xe1   :  { %v187_v55 = vpop.f32.mrf.mxu0  ;;  %v300_v33 = vpop.f32.mrf.mxu1 }
  0xe2   :  { %v2491_v51 = vadd.f32 %v187_v55, %v54_v4  ;;  %v2494_v60 = vadd.f32 %v300_v33, %v2480_v8 }
  0xe3   :  { %v189_v6 = vpop.f32.mrf.mxu0  ;;  %v302_v1 = vpop.f32.mrf.mxu1 }
  0xe4   :  { %3323 = vst [vmem:[#allocation34_spill] sm:$0xff] %v2491_v51  ;;  %3324 = vst [vmem:[#allocation35_spill] sm:$0xff] %v2494_v60  ;;  %v2496_v7 = vadd.f32 %v189_v6, %v58_v2  ;;  %v2498_v24 = vadd.f32 %v302_v1, %v66_v0 }
  0xe6   :  { %3325 = vst [vmem:[#allocation36_spill] sm:$0xff] %v2496_v7  ;;  %3326 = vst [vmem:[#allocation37_spill] sm:$0xff] %v2498_v24 }
  0xe7   :  { %v193_v3 = vpop.f32.mrf.mxu0  ;;  %v306_v62 = vpop.f32.mrf.mxu1 }
  0xe8   :  { %v2500_v63 = vadd.f32 %v193_v3, %v54_v4  ;;  %v2503_v59 = vadd.f32 %v306_v62, %v2480_v8 }
  0xe9   :  { %v195_v61 = vpop.f32.mrf.mxu0  ;;  %v308_v57 = vpop.f32.mrf.mxu1 }
  0xea   :  { %3327 = vst [vmem:[#allocation38_spill] sm:$0xff] %v2500_v63  ;;  %3328 = vst [vmem:[#allocation39_spill] sm:$0xff] %v2503_v59  ;;  %v2505_v55 = vadd.f32 %v195_v61, %v58_v2  ;;  %v2507_v51 = vadd.f32 %v308_v57, %v66_v0 }
  0xec   :  { %3329 = vst [vmem:[#allocation40_spill] sm:$0xff] %v2505_v55  ;;  %3330 = vst [vmem:[#allocation41_spill] sm:$0xff] %v2507_v51 }
  0xed   :  { %v199_v33 = vpop.f32.mrf.mxu0  ;;  %v312_v60 = vpop.f32.mrf.mxu1 }
  0xee   :  { %v2509_v58 = vadd.f32 %v199_v33, %v54_v4  ;;  %v2512_v6 = vadd.f32 %v312_v60, %v2480_v8 }
  0xef   :  { %v201_v1 = vpop.f32.mrf.mxu0  ;;  %v314_v24 = vpop.f32.mrf.mxu1 }
  0xf0   :  { %3331 = vst [vmem:[#allocation42_spill] sm:$0xff] %v2509_v58  ;;  %3332 = vst [vmem:[#allocation43_spill] sm:$0xff] %v2512_v6  ;;  %v2514_v3 = vadd.f32 %v201_v1, %v58_v2  ;;  %v2516_v63 = vadd.f32 %v314_v24, %v66_v0 }
  0xf2   :  { %3333 = vst [vmem:[#allocation44_spill] sm:$0xff] %v2514_v3  ;;  %3334 = vst [vmem:[#allocation45_spill] sm:$0xff] %v2516_v63 }
  0xf3   :  { %v205_v62 = vpop.f32.mrf.mxu0  ;;  %v318_v59 = vpop.f32.mrf.mxu1 }
  0xf4   :  { %v2518_v7 = vadd.f32 %v205_v62, %v54_v4  ;;  %v2521_v57 = vadd.f32 %v318_v59, %v2480_v8 }
  0xf5   :  { %v207_v61 = vpop.f32.mrf.mxu0  ;;  %v320_v51 = vpop.f32.mrf.mxu1 }
  0xf6   :  { %3335 = vst [vmem:[#allocation46_spill] sm:$0xff] %v2518_v7  ;;  %3336 = vst [vmem:[#allocation47_spill] sm:$0xff] %v2521_v57  ;;  %v2523_v33 = vadd.f32 %v207_v61, %v58_v2  ;;  %v2525_v58 = vadd.f32 %v320_v51, %v66_v0 }
  0xf8   :  { %3337 = vst [vmem:[#allocation48_spill] sm:$0xff] %v2523_v33  ;;  %3338 = vst [vmem:[#allocation49_spill] sm:$0xff] %v2525_v58 }
  0xf9   :  { %v211_v60 = vpop.f32.mrf.mxu0  ;;  %v324_v6 = vpop.f32.mrf.mxu1 }
  0xfa   :  { %v2527_v55 = vadd.f32 %v211_v60, %v54_v4  ;;  %v2530_v24 = vadd.f32 %v324_v6, %v2480_v8  ;;  %v176_v6 = vadd.f32 %v2469_v15, %v54_v4 }
  0xfb   :  { %v213_v1 = vpop.f32.mrf.mxu0  ;;  %v326_v63 = vpop.f32.mrf.mxu1 }
  0xfc   :  { %3339 = vst [vmem:[#allocation50_spill] sm:$0xff] %v2527_v55  ;;  %3340 = vst [vmem:[#allocation51_spill] sm:$0xff] %v2530_v24  ;;  %v2532_v62 = vadd.f32 %v213_v1, %v58_v2  ;;  %v2534_v7 = vadd.f32 %v326_v63, %v66_v0  ;;  %v178_v63 = vadd.f32 %v2476_v56, %v58_v2 }
  0xfe   :  { %3341 = vst [vmem:[#allocation52_spill] sm:$0xff] %v2532_v62  ;;  %3342 = vst [vmem:[#allocation53_spill] sm:$0xff] %v2534_v7 }
  0xff   :  { %v217_v59 = vpop.f32.mrf.mxu0  ;;  %v330_v57 = vpop.f32.mrf.mxu1 }
 0x100   :  { %v2536_v3 = vadd.f32 %v217_v59, %v54_v4  ;;  %v2539_v51 = vadd.f32 %v330_v57, %v2480_v8  ;;  %v291_v59 = vadd.f32 %v2478_v5, %v66_v0 }
 0x101   :  { %v219_v61 = vpop.f32.mrf.mxu0  ;;  %v332_v58 = vpop.f32.mrf.mxu1 }
 0x102   :  { %3343 = vst [vmem:[#allocation54_spill] sm:$0xff] %v2536_v3  ;;  %3344 = vst [vmem:[#allocation55_spill] sm:$0xff] %v2539_v51  ;;  %v2541_v60 = vadd.f32 %v219_v61, %v58_v2  ;;  %v2543_v55 = vadd.f32 %v332_v58, %v66_v0  ;;  %v289_v58 = vadd.f32 %v2471_v42, %v2480_v8  ;;  %v3347_v42 = vld [vmem:[#allocation9_spill] sm:$0xff] }
 0x104   :  { %3345 = vst [vmem:[#allocation56_spill] sm:$0xff] %v2541_v60  ;;  %3346 = vst [vmem:[#allocation57_spill] sm:$0xff] %v2543_v55 }
 0x105   :  { %v501_v24 = vpop.f32.mrf.mxu0  ;;  %v572_v1 = vpop.f32.mrf.mxu1 }
 0x106   :  { %v577_v7 = vadd.f32 %v501_v24, %v176_v6  ;;  %v579_v61 = vadd.f32 %v572_v1, %v289_v58  ;;  %v3352_v1 = vld [vmem:[#allocation14_spill] sm:$0xff] }
 0x107   :  { %v503_v62 = vpop.f32.mrf.mxu0  ;;  %v574_v33 = vpop.f32.mrf.mxu1  ;;  %v3356_v58 = vld [vmem:[#allocation18_spill] sm:$0xff] }
 0x108   :  { %1931 = vtanh.f32 %v577_v7  ;;  %v578_v57 = vadd.f32 %v503_v62, %v178_v63  ;;  %v580_v51 = vadd.f32 %v574_v33, %v291_v59  ;;  %v3353_v63 = vld [vmem:[#allocation15_spill] sm:$0xff]  ;;  %v3354_v59 = vld [vmem:[#allocation16_spill] sm:$0xff] }
 0x10a   :  { %1933 = vtanh.f32 %v578_v57  ;;  %v3355_v57 = vld [vmem:[#allocation17_spill] sm:$0xff] }
 0x10b   :  { %1935 = vtanh.f32 %v580_v51  ;;  %v3350_v51 = vld [vmem:[#allocation12_spill] sm:$0xff] }
 0x10c   :  { %1937 = vtanh.f32 %v579_v61  ;;  %v3357_v61 = vld [vmem:[#allocation19_spill] sm:$0xff] }
 0x115   :  { %v1932_v55 = vpop.eup %1931 }
 0x116   :  { %v585_v4 = vadd.f32 1.0, %v1932_v55  ;;  %v3348_v55 = vld [vmem:[#allocation10_spill] sm:$0xff] }
 0x117   :  { %v1934_v15 = vpop.eup %1933 }
 0x118   :  { %v588_v60 = vmul.f32 0.5, %v585_v4  ;;  %v586_v56 = vadd.f32 1.0, %v1934_v15  ;;  %v1936_v24 = vpop.eup %1935  ;;  %v3358_v4 = vld [vmem:[#allocation20_spill] sm:$0xff]  ;;  %v3359_v15 = vld [vmem:[#allocation21_spill] sm:$0xff] }
 0x119   :  { %v1938_v5 = vpop.eup %1937 }
 0x11a   :  { %v589_v2 = vmul.f32 0.5, %v586_v56  ;;  %v592_v3 = vmul.f32 %v1936_v24, %v588_v60  ;;  %v587_v7 = vadd.f32 1.0, %v1938_v5  ;;  %v3351_v60 = vld [vmem:[#allocation13_spill] sm:$0xff]  ;;  %v3360_v56 = vld [vmem:[#allocation22_spill] sm:$0xff]  ;;  %v3362_v24 = vld [vmem:[#allocation24_spill] sm:$0xff] }
 0x11b   :  { %v3364_v5 = vld [vmem:[#allocation26_spill] sm:$0xff] }
 0x11c   :  { %v591_v6 = vmul.f32 0.0, %v589_v2  ;;  %v590_v33 = vmul.f32 0.5, %v587_v7  ;;  %v3361_v2 = vld [vmem:[#allocation23_spill] sm:$0xff] }
 0x11d   :  { %v3365_v7 = vld [vmem:[#allocation27_spill] sm:$0xff] }
 0x11e   :  { %v2550_v0 = vadd.f32 %v592_v3, %v591_v6  ;;  %v3349_v3 = vld [vmem:[#allocation11_spill] sm:$0xff]  ;;  %v3363_v6 = vld [vmem:[#allocation25_spill] sm:$0xff] }
 0x120   :  { %1939 = vtanh.f32 %v2550_v0 }
 0x12d   :  { %v1940_v62 = vpop.eup %1939 }
 0x12e   :  { %v595_v8 = vmul.f32 %v1940_v62, %v590_v33  ;;  %v3366_v33 = vld [vmem:[#allocation28_spill] sm:$0xff]  ;;  %v3367_v62 = vmov 0.0  }
 0x130   :  { %665 = vmatmul.mubr.f32.vlgmr.msra.gmra.mxu0 %v595_v8  ;;  %736 = vmatmul.mubr.f32.vlgmr.msra.gmra.mxu1 %v595_v8  ;;  %v3368_v8 = vld [vmem:[#allocation29_spill] sm:$0xff] }
 0x131   :  { %766 = vmatpush1.msra.mxu0 %v2158_v9  ;;  %837 = vmatpush1.msra.mxu1 %v2160_v10 }
 0x132   :  { %767 = vmatprep.subr.mxu0 %v2164_v11  ;;  %838 = vmatprep.subr.mxu1 %v2166_v12 }
 0x133   :  { %768 = vmatpush1.msra.mxu0 %v2172_v13  ;;  %839 = vmatpush1.msra.mxu1 %v2174_v14 }
 0x134   :  { %769 = vmatprep.subr.mxu0 %v2183_v16  ;;  %840 = vmatprep.subr.mxu1 %v2185_v17 }
 0x135   :  { %770 = vmatpush1.msra.mxu0 %v2189_v18  ;;  %841 = vmatpush1.msra.mxu1 %v2191_v19 }
 0x136   :  { %771 = vmatprep.subr.mxu0 %v2195_v20  ;;  %842 = vmatprep.subr.mxu1 %v2197_v21 }
 0x137   :  { %772 = vmatpush1.msra.mxu0 %v2203_v22  ;;  %843 = vmatpush1.msra.mxu1 %v2205_v23 }
 0x138   :  { %773 = vmatprep.subr.mxu0 %v2214_v25  ;;  %844 = vmatprep.subr.mxu1 %v2216_v26 }
 0x139   :  { %774 = vmatpush1.msra.mxu0 %v2220_v27  ;;  %845 = vmatpush1.msra.mxu1 %v2222_v28 }
 0x13a   :  { %775 = vmatprep.subr.mxu0 %v2226_v29  ;;  %846 = vmatprep.subr.mxu1 %v2228_v30 }
 0x13b   :  { %776 = vmatpush1.msra.mxu0 %v2234_v31  ;;  %847 = vmatpush1.msra.mxu1 %v2236_v32 }
 0x13c   :  { %777 = vmatprep.subr.mxu0 %v2245_v34  ;;  %848 = vmatprep.subr.mxu1 %v2247_v35 }
 0x13d   :  { %778 = vmatpush1.msra.mxu0 %v2251_v36  ;;  %849 = vmatpush1.msra.mxu1 %v2253_v37 }
 0x13e   :  { %779 = vmatprep.subr.mxu0 %v2257_v38  ;;  %850 = vmatprep.subr.mxu1 %v2259_v39 }
 0x13f   :  { %780 = vmatpush1.msra.mxu0 %v2265_v40  ;;  %851 = vmatpush1.msra.mxu1 %v2267_v41 }
 0x140   :  { %781 = vmatprep.subr.mxu0 %v2276_v43  ;;  %852 = vmatprep.subr.mxu1 %v2278_v44 }
 0x141   :  { %782 = vmatpush1.msra.mxu0 %v2282_v45  ;;  %853 = vmatpush1.msra.mxu1 %v2284_v46 }
 0x142   :  { %783 = vmatprep.subr.mxu0 %v2288_v47  ;;  %854 = vmatprep.subr.mxu1 %v2290_v48 }
 0x143   :  { %784 = vmatpush1.msra.mxu0 %v2296_v49  ;;  %855 = vmatpush1.msra.mxu1 %v2298_v50 }
 0x144   :  { %785 = vmatprep.subr.mxu0 %v2307_v52  ;;  %856 = vmatprep.subr.mxu1 %v2309_v53 }
 0x145   :  { %786 = vmatpush1.msra.mxu0 %v2313_v54  ;;  %857 = vmatpush1.msra.mxu1 %v3347_v42 }
 0x146   :  { %787 = vmatprep.subr.mxu0 %v3348_v55  ;;  %858 = vmatprep.subr.mxu1 %v3349_v3 }
 0x147   :  { %788 = vmatpush1.msra.mxu0 %v3350_v51  ;;  %859 = vmatpush1.msra.mxu1 %v3351_v60 }
 0x148   :  { %789 = vmatprep.subr.mxu0 %v3352_v1  ;;  %860 = vmatprep.subr.mxu1 %v3353_v63 }
 0x149   :  { %790 = vmatpush1.msra.mxu0 %v3354_v59  ;;  %861 = vmatpush1.msra.mxu1 %v3355_v57 }
 0x14a   :  { %791 = vmatprep.subr.mxu0 %v3356_v58  ;;  %862 = vmatprep.subr.mxu1 %v3357_v61 }
 0x14b   :  { %792 = vmatpush1.msra.mxu0 %v3358_v4  ;;  %863 = vmatpush1.msra.mxu1 %v3359_v15  ;;  %v3369_v15 = vld [vmem:[#allocation7_spill] sm:$0xff]  ;;  %v3371_v4 = vld [vmem:[#allocation30_spill] sm:$0xff] }
 0x14c   :  { %793 = vmatprep.subr.mxu0 %v3360_v56  ;;  %864 = vmatprep.subr.mxu1 %v3361_v2  ;;  %v3370_v56 = vld [vmem:[#allocation8_spill] sm:$0xff] }
 0x14d   :  { %794 = vmatpush1.msra.mxu0 %v3362_v24  ;;  %865 = vmatpush1.msra.mxu1 %v3363_v6 }
 0x14e   :  { %795 = vmatprep.subr.mxu0 %v3364_v5  ;;  %866 = vmatprep.subr.mxu1 %v3365_v7  ;;  %v3372_v7 = vld [vmem:[#allocation32_spill] sm:$0xff] }
 0x14f   :  { %796 = vmatpush1.msra.mxu0 %v3366_v33  ;;  %829 = vmatprep.mubr.f32.mxu0 %v3367_v62  ;;  %v3373_v33 = vld [vmem:[#allocation33_spill] sm:$0xff] }
 0x150   :  { %867 = vmatpush1.msra.mxu1 %v3368_v8  ;;  %900 = vmatprep.mubr.f32.mxu1 %v3367_v62  ;;  %v3374_v8 = vld [vmem:[#allocation31_spill] sm:$0xff] }
 0x151   :  { %930 = vmatprep.subr.mxu0 %v3369_v15  ;;  %1001 = vmatprep.subr.mxu1 %v3370_v56 }
 0x1f0   :  { %v666_v2 = vpop.f32.mrf.mxu0  ;;  %v737_v24 = vpop.f32.mrf.mxu1 }
 0x1f1   :  { %v742_v6 = vadd.f32 %v666_v2, %v3371_v4  ;;  %v744_v59 = vadd.f32 %v737_v24, %v3374_v8 }
 0x1f2   :  { %v668_v61 = vpop.f32.mrf.mxu0  ;;  %v739_v5 = vpop.f32.mrf.mxu1 }
 0x1f3   :  { %1941 = vtanh.f32 %v742_v6  ;;  %v743_v58 = vadd.f32 %v668_v61, %v3372_v7  ;;  %v745_v57 = vadd.f32 %v739_v5, %v3373_v33  ;;  %v3396_v33 = vld [vmem:[#allocation34_spill] sm:$0xff] }
 0x1f5   :  { %1943 = vtanh.f32 %v743_v58 }
 0x1f6   :  { %1945 = vtanh.f32 %v745_v57 }
 0x1f7   :  { %1947 = vtanh.f32 %v744_v59  ;;  %v3394_v59 = vld [vmem:[#allocation7_spill] sm:$0xff] }
 0x200   :  { %v1942_v62 = vpop.eup %1941 }
 0x201   :  { %v750_v63 = vadd.f32 1.0, %v1942_v62 }
 0x202   :  { %v1944_v15 = vpop.eup %1943 }
 0x203   :  { %v753_v1 = vmul.f32 0.5, %v750_v63  ;;  %v751_v56 = vadd.f32 1.0, %v1944_v15  ;;  %v1946_v60 = vpop.eup %1945  ;;  %v3393_v63 = vld [vmem:[#allocation29_spill] sm:$0xff]  ;;  %v3395_v15 = vld [vmem:[#allocation8_spill] sm:$0xff] }
 0x204   :  { %v1948_v61 = vpop.eup %1947 }
 0x205   :  { %v754_v51 = vmul.f32 0.5, %v751_v56  ;;  %v757_v4 = vmul.f32 %v1946_v60, %v753_v1  ;;  %v752_v58 = vadd.f32 1.0, %v1948_v61  ;;  %v3391_v60 = vld [vmem:[#allocation28_spill] sm:$0xff]  ;;  %v3392_v1 = vmov 0.0  }
 0x207   :  { %v756_v2 = vmul.f32 %v754_v51, %v2550_v0  ;;  %v755_v57 = vmul.f32 0.5, %v752_v58  ;;  %v3389_v0 = vld [vmem:[#allocation26_spill] sm:$0xff]  ;;  %v3390_v51 = vld [vmem:[#allocation27_spill] sm:$0xff]  ;;  %v3398_v58 = vld [vmem:[#allocation37_spill] sm:$0xff] }
 0x209   :  { %v2624_v6 = vadd.f32 %v757_v4, %v756_v2  ;;  %v3397_v2 = vld [vmem:[#allocation36_spill] sm:$0xff] }
 0x20b   :  { %1949 = vtanh.f32 %v2624_v6 }
 0x218   :  { %v1950_v5 = vpop.eup %1949 }
 0x219   :  { %v760_v24 = vmul.f32 %v1950_v5, %v755_v57  ;;  %v3399_v5 = vld [vmem:[#allocation35_spill] sm:$0xff] }
 0x21b   :  { %830 = vmatmul.mubr.f32.vlgmr.msra.gmra.mxu0 %v760_v24  ;;  %901 = vmatmul.mubr.f32.vlgmr.msra.gmra.mxu1 %v760_v24 }
 0x21c   :  { %931 = vmatpush1.msra.mxu0 %v2158_v9  ;;  %1002 = vmatpush1.msra.mxu1 %v2160_v10  ;;  %v3375_v9 = vld [vmem:[#allocation12_spill] sm:$0xff]  ;;  %v3376_v10 = vld [vmem:[#allocation13_spill] sm:$0xff] }
 0x21d   :  { %932 = vmatprep.subr.mxu0 %v2164_v11  ;;  %1003 = vmatprep.subr.mxu1 %v2166_v12  ;;  %v3377_v11 = vld [vmem:[#allocation14_spill] sm:$0xff]  ;;  %v3378_v12 = vld [vmem:[#allocation15_spill] sm:$0xff] }
 0x21e   :  { %933 = vmatpush1.msra.mxu0 %v2172_v13  ;;  %1004 = vmatpush1.msra.mxu1 %v2174_v14  ;;  %v3379_v13 = vld [vmem:[#allocation16_spill] sm:$0xff]  ;;  %v3380_v14 = vld [vmem:[#allocation17_spill] sm:$0xff] }
 0x21f   :  { %934 = vmatprep.subr.mxu0 %v2183_v16  ;;  %1005 = vmatprep.subr.mxu1 %v2185_v17  ;;  %v3381_v16 = vld [vmem:[#allocation18_spill] sm:$0xff]  ;;  %v3382_v17 = vld [vmem:[#allocation19_spill] sm:$0xff] }
 0x220   :  { %935 = vmatpush1.msra.mxu0 %v2189_v18  ;;  %1006 = vmatpush1.msra.mxu1 %v2191_v19  ;;  %v3383_v18 = vld [vmem:[#allocation20_spill] sm:$0xff]  ;;  %v3384_v19 = vld [vmem:[#allocation21_spill] sm:$0xff] }
 0x221   :  { %936 = vmatprep.subr.mxu0 %v2195_v20  ;;  %1007 = vmatprep.subr.mxu1 %v2197_v21  ;;  %v3385_v20 = vld [vmem:[#allocation22_spill] sm:$0xff]  ;;  %v3386_v21 = vld [vmem:[#allocation23_spill] sm:$0xff] }
 0x222   :  { %937 = vmatpush1.msra.mxu0 %v2203_v22  ;;  %1008 = vmatpush1.msra.mxu1 %v2205_v23  ;;  %v3387_v22 = vld [vmem:[#allocation24_spill] sm:$0xff]  ;;  %v3388_v23 = vld [vmem:[#allocation25_spill] sm:$0xff] }
 0x223   :  { %938 = vmatprep.subr.mxu0 %v2214_v25  ;;  %1009 = vmatprep.subr.mxu1 %v2216_v26 }
 0x224   :  { %939 = vmatpush1.msra.mxu0 %v2220_v27  ;;  %1010 = vmatpush1.msra.mxu1 %v2222_v28 }
 0x225   :  { %940 = vmatprep.subr.mxu0 %v2226_v29  ;;  %1011 = vmatprep.subr.mxu1 %v2228_v30 }
 0x226   :  { %941 = vmatpush1.msra.mxu0 %v2234_v31  ;;  %1012 = vmatpush1.msra.mxu1 %v2236_v32 }
 0x227   :  { %942 = vmatprep.subr.mxu0 %v2245_v34  ;;  %1013 = vmatprep.subr.mxu1 %v2247_v35 }
 0x228   :  { %943 = vmatpush1.msra.mxu0 %v2251_v36  ;;  %1014 = vmatpush1.msra.mxu1 %v2253_v37 }
 0x229   :  { %944 = vmatprep.subr.mxu0 %v2257_v38  ;;  %1015 = vmatprep.subr.mxu1 %v2259_v39 }
 0x22a   :  { %945 = vmatpush1.msra.mxu0 %v2265_v40  ;;  %1016 = vmatpush1.msra.mxu1 %v2267_v41 }
 0x22b   :  { %946 = vmatprep.subr.mxu0 %v2276_v43  ;;  %1017 = vmatprep.subr.mxu1 %v2278_v44 }
 0x22c   :  { %947 = vmatpush1.msra.mxu0 %v2282_v45  ;;  %1018 = vmatpush1.msra.mxu1 %v2284_v46 }
 0x22d   :  { %948 = vmatprep.subr.mxu0 %v2288_v47  ;;  %1019 = vmatprep.subr.mxu1 %v2290_v48 }
 0x22e   :  { %949 = vmatpush1.msra.mxu0 %v2296_v49  ;;  %1020 = vmatpush1.msra.mxu1 %v2298_v50 }
 0x22f   :  { %950 = vmatprep.subr.mxu0 %v2307_v52  ;;  %1021 = vmatprep.subr.mxu1 %v2309_v53 }
 0x230   :  { %951 = vmatpush1.msra.mxu0 %v2313_v54  ;;  %1022 = vmatpush1.msra.mxu1 %v3347_v42 }
 0x231   :  { %952 = vmatprep.subr.mxu0 %v3348_v55  ;;  %1023 = vmatprep.subr.mxu1 %v3349_v3 }
 0x232   :  { %953 = vmatpush1.msra.mxu0 %v3375_v9  ;;  %1024 = vmatpush1.msra.mxu1 %v3376_v10 }
 0x233   :  { %954 = vmatprep.subr.mxu0 %v3377_v11  ;;  %1025 = vmatprep.subr.mxu1 %v3378_v12 }
 0x234   :  { %955 = vmatpush1.msra.mxu0 %v3379_v13  ;;  %1026 = vmatpush1.msra.mxu1 %v3380_v14 }
 0x235   :  { %956 = vmatprep.subr.mxu0 %v3381_v16  ;;  %1027 = vmatprep.subr.mxu1 %v3382_v17 }
 0x236   :  { %957 = vmatpush1.msra.mxu0 %v3383_v18  ;;  %1028 = vmatpush1.msra.mxu1 %v3384_v19 }
 0x237   :  { %958 = vmatprep.subr.mxu0 %v3385_v20  ;;  %1029 = vmatprep.subr.mxu1 %v3386_v21 }
 0x238   :  { %959 = vmatpush1.msra.mxu0 %v3387_v22  ;;  %1030 = vmatpush1.msra.mxu1 %v3388_v23 }
 0x239   :  { %960 = vmatprep.subr.mxu0 %v3389_v0  ;;  %1031 = vmatprep.subr.mxu1 %v3390_v51 }
 0x23a   :  { %961 = vmatpush1.msra.mxu0 %v3391_v60  ;;  %994 = vmatprep.mubr.f32.mxu0 %v3392_v1 }
 0x23b   :  { %1032 = vmatpush1.msra.mxu1 %v3393_v63  ;;  %1065 = vmatprep.mubr.f32.mxu1 %v3392_v1 }
 0x23c   :  { %1095 = vmatprep.subr.mxu0 %v3394_v59  ;;  %1166 = vmatprep.subr.mxu1 %v3395_v15 }
 0x2db   :  { %v831_v56 = vpop.f32.mrf.mxu0  ;;  %v902_v7 = vpop.f32.mrf.mxu1 }
 0x2dc   :  { %v907_v62 = vadd.f32 %v831_v56, %v3396_v33  ;;  %v909_v24 = vadd.f32 %v902_v7, %v3399_v5  ;;  %v2725_v5 = vld [vmem:[#allocation4 + $0x1a0] sm:$0xff] }
 0x2dd   :  { %v833_v8 = vpop.f32.mrf.mxu0  ;;  %v904_v4 = vpop.f32.mrf.mxu1 }
 0x2de   :  { %1951 = vtanh.f32 %v907_v62  ;;  %v908_v61 = vadd.f32 %v833_v8, %v3397_v2  ;;  %v910_v57 = vadd.f32 %v904_v4, %v3398_v58  ;;  %v2719_v58 = vld [vmem:[#allocation4 + $0x1a8] sm:$0xff] }
 0x2e0   :  { %1953 = vtanh.f32 %v908_v61 }
 0x2e1   :  { %1955 = vtanh.f32 %v910_v57  ;;  %v2722_v57 = vld [vmem:[#allocation4 + $0x1b8] sm:$0xff] }
 0x2e2   :  { %1957 = vtanh.f32 %v909_v24  ;;  %v2728_v24 = vld [vmem:[#allocation4 + $0x1b0] sm:$0xff] }
 0x2eb   :  { %v1952_v63 = vpop.eup %1951 }
 0x2ec   :  { %v915_v1 = vadd.f32 1.0, %v1952_v63  ;;  %v2701_v63 = vld [vmem:[#allocation4 + $0x1e0] sm:$0xff] }
 0x2ed   :  { %v1954_v59 = vpop.eup %1953 }
 0x2ee   :  { %v918_v60 = vmul.f32 0.5, %v915_v1  ;;  %v916_v15 = vadd.f32 1.0, %v1954_v59  ;;  %v1956_v51 = vpop.eup %1955  ;;  %v2704_v1 = vld [vmem:[#allocation4 + $0x1f0] sm:$0xff]  ;;  %v2731_v59 = vld [vmem:[#allocation4 + $0x188] sm:$0xff] }
 0x2ef   :  { %v1958_v8 = vpop.eup %1957 }
 0x2f0   :  { %v919_v0 = vmul.f32 0.5, %v916_v15  ;;  %v922_v56 = vmul.f32 %v1956_v51, %v918_v60  ;;  %v917_v4 = vadd.f32 1.0, %v1958_v8  ;;  %v2713_v51 = vld [vmem:[#allocation4 + $0x1c0] sm:$0xff]  ;;  %v2716_v60 = vld [vmem:[#allocation4 + $0x1d0] sm:$0xff]  ;;  %v2734_v15 = vld [vmem:[#allocation4 + $0x198] sm:$0xff] }
 0x2f1   :  { %v2854_v8 = vld [vmem:[#allocation4 + $0x130] sm:$0xff] }
 0x2f2   :  { %v921_v33 = vmul.f32 %v919_v0, %v2624_v6  ;;  %v920_v2 = vmul.f32 0.5, %v917_v4  ;;  %v2707_v6 = vld [vmem:[#allocation4 + $0x1c8] sm:$0xff]  ;;  %v2710_v0 = vld [vmem:[#allocation4 + $0x1d8] sm:$0xff] }
 0x2f3   :  { %v2857_v4 = vld [vmem:[#allocation4 + $0x108] sm:$0xff] }
 0x2f4   :  { %v2698_v62 = vadd.f32 %v922_v56, %v921_v33  ;;  %v2737_v56 = vld [vmem:[#allocation4 + $0x180] sm:$0xff]  ;;  %v2740_v33 = vld [vmem:[#allocation4 + $0x190] sm:$0xff] }
 0x2f6   :  { %1959 = vtanh.f32 %v2698_v62 }
 0x303   :  { %v1960_v61 = vpop.eup %1959 }
 0x304   :  { %v925_v7 = vmul.f32 %v1960_v61, %v920_v2  ;;  %v2860_v2 = vld [vmem:[#allocation4 + $0x118] sm:$0xff]  ;;  %v2863_v61 = vld [vmem:[#allocation4 + $0x100] sm:$0xff] }
 0x306   :  { %995 = vmatmul.mubr.f32.vlgmr.msra.gmra.mxu0 %v925_v7  ;;  %1066 = vmatmul.mubr.f32.vlgmr.msra.gmra.mxu1 %v925_v7  ;;  %v2866_v7 = vld [vmem:[#allocation4 + $0x110] sm:$0xff] }
 0x307   :  { %1096 = vmatpush1.msra.mxu0 %v2701_v63  ;;  %1167 = vmatpush1.msra.mxu1 %v2704_v1 }
 0x308   :  { %1097 = vmatprep.subr.mxu0 %v2707_v6  ;;  %1168 = vmatprep.subr.mxu1 %v2710_v0 }
 0x309   :  { %1098 = vmatpush1.msra.mxu0 %v2713_v51  ;;  %1169 = vmatpush1.msra.mxu1 %v2716_v60 }
 0x30a   :  { %1099 = vmatprep.subr.mxu0 %v2719_v58  ;;  %1170 = vmatprep.subr.mxu1 %v2722_v57 }
 0x30b   :  { %1100 = vmatpush1.msra.mxu0 %v2725_v5  ;;  %1171 = vmatpush1.msra.mxu1 %v2728_v24 }
 0x30c   :  { %1101 = vmatprep.subr.mxu0 %v2731_v59  ;;  %1172 = vmatprep.subr.mxu1 %v2734_v15 }
 0x30d   :  { %1102 = vmatpush1.msra.mxu0 %v2737_v56  ;;  %1173 = vmatpush1.msra.mxu1 %v2740_v33 }
 0x30e   :  { %1103 = vmatprep.subr.mxu0 %v2214_v25  ;;  %1174 = vmatprep.subr.mxu1 %v2216_v26  ;;  %v3400_v25 = vld [vmem:[#allocation26_spill] sm:$0xff]  ;;  %v3401_v26 = vld [vmem:[#allocation27_spill] sm:$0xff] }
 0x30f   :  { %1104 = vmatpush1.msra.mxu0 %v2220_v27  ;;  %1175 = vmatpush1.msra.mxu1 %v2222_v28  ;;  %v3402_v27 = vld [vmem:[#allocation28_spill] sm:$0xff]  ;;  %v3403_v28 = vmov 0.0  }
 0x310   :  { %1105 = vmatprep.subr.mxu0 %v2226_v29  ;;  %1176 = vmatprep.subr.mxu1 %v2228_v30  ;;  %v3404_v29 = vld [vmem:[#allocation29_spill] sm:$0xff]  ;;  %v2793_v30 = vld [vmem:[#allocation4 + $0x1e8] sm:$0xff] }
 0x311   :  { %1106 = vmatpush1.msra.mxu0 %v2234_v31  ;;  %1177 = vmatpush1.msra.mxu1 %v2236_v32  ;;  %3405 = vst [vmem:[#allocation9_spill] sm:$0xff] %v2793_v30  ;;  %v2796_v31 = vld [vmem:[#allocation4 + $0x1f8] sm:$0xff] }
 0x312   :  { %1107 = vmatprep.subr.mxu0 %v2245_v34  ;;  %1178 = vmatprep.subr.mxu1 %v2247_v35  ;;  %3406 = vst [vmem:[#allocation10_spill] sm:$0xff] %v2796_v31  ;;  %v3407_v35 = vld [vmem:[#allocation38_spill] sm:$0xff] }
 0x313   :  { %1108 = vmatpush1.msra.mxu0 %v2251_v36  ;;  %1179 = vmatpush1.msra.mxu1 %v2253_v37 }
 0x314   :  { %1109 = vmatprep.subr.mxu0 %v2257_v38  ;;  %1180 = vmatprep.subr.mxu1 %v2259_v39  ;;  %v3408_v39 = vld [vmem:[#allocation40_spill] sm:$0xff] }
 0x315   :  { %1110 = vmatpush1.msra.mxu0 %v2265_v40  ;;  %1181 = vmatpush1.msra.mxu1 %v2267_v41  ;;  %v3409_v41 = vld [vmem:[#allocation41_spill] sm:$0xff] }
 0x316   :  { %1111 = vmatprep.subr.mxu0 %v2276_v43  ;;  %1182 = vmatprep.subr.mxu1 %v2278_v44  ;;  %v3410_v44 = vld [vmem:[#allocation39_spill] sm:$0xff] }
 0x317   :  { %1112 = vmatpush1.msra.mxu0 %v2282_v45  ;;  %1183 = vmatpush1.msra.mxu1 %v2284_v46 }
 0x318   :  { %1113 = vmatprep.subr.mxu0 %v2288_v47  ;;  %1184 = vmatprep.subr.mxu1 %v2290_v48 }
 0x319   :  { %1114 = vmatpush1.msra.mxu0 %v2296_v49  ;;  %1185 = vmatpush1.msra.mxu1 %v2298_v50 }
 0x31a   :  { %1115 = vmatprep.subr.mxu0 %v2307_v52  ;;  %1186 = vmatprep.subr.mxu1 %v2309_v53 }
 0x31b   :  { %1116 = vmatpush1.msra.mxu0 %v2313_v54  ;;  %1187 = vmatpush1.msra.mxu1 %v3347_v42 }
 0x31c   :  { %1117 = vmatprep.subr.mxu0 %v3348_v55  ;;  %1188 = vmatprep.subr.mxu1 %v3349_v3 }
 0x31d   :  { %1118 = vmatpush1.msra.mxu0 %v3375_v9  ;;  %1189 = vmatpush1.msra.mxu1 %v3376_v10 }
 0x31e   :  { %1119 = vmatprep.subr.mxu0 %v3377_v11  ;;  %1190 = vmatprep.subr.mxu1 %v3378_v12 }
 0x31f   :  { %1120 = vmatpush1.msra.mxu0 %v3379_v13  ;;  %1191 = vmatpush1.msra.mxu1 %v3380_v14  ;;  %v2821_v13 = vld [vmem:[#allocation4 + $0x168] sm:$0xff]  ;;  %v2824_v14 = vld [vmem:[#allocation4 + $0x178] sm:$0xff] }
 0x320   :  { %1121 = vmatprep.subr.mxu0 %v3381_v16  ;;  %1192 = vmatprep.subr.mxu1 %v3382_v17  ;;  %v2827_v16 = vld [vmem:[#allocation4 + $0x160] sm:$0xff]  ;;  %v2830_v17 = vld [vmem:[#allocation4 + $0x170] sm:$0xff] }
 0x321   :  { %1122 = vmatpush1.msra.mxu0 %v3383_v18  ;;  %1193 = vmatpush1.msra.mxu1 %v3384_v19  ;;  %v2833_v18 = vld [vmem:[#allocation4 + $0x148] sm:$0xff]  ;;  %v2836_v19 = vld [vmem:[#allocation4 + $0x158] sm:$0xff] }
 0x322   :  { %1123 = vmatprep.subr.mxu0 %v3385_v20  ;;  %1194 = vmatprep.subr.mxu1 %v3386_v21  ;;  %v2839_v20 = vld [vmem:[#allocation4 + $0x140] sm:$0xff]  ;;  %v2842_v21 = vld [vmem:[#allocation4 + $0x150] sm:$0xff] }
 0x323   :  { %1124 = vmatpush1.msra.mxu0 %v3387_v22  ;;  %1195 = vmatpush1.msra.mxu1 %v3388_v23  ;;  %v2845_v22 = vld [vmem:[#allocation4 + $0x128] sm:$0xff]  ;;  %v2848_v23 = vld [vmem:[#allocation4 + $0x138] sm:$0xff] }
 0x324   :  { %1125 = vmatprep.subr.mxu0 %v3400_v25  ;;  %1196 = vmatprep.subr.mxu1 %v3401_v26  ;;  %v2869_v25 = vld [vmem:[#allocation4 + $0xe8] sm:$0xff]  ;;  %v2872_v26 = vld [vmem:[#allocation4 + $0xf8] sm:$0xff] }
 0x325   :  { %1126 = vmatpush1.msra.mxu0 %v3402_v27  ;;  %1159 = vmatprep.mubr.f32.mxu0 %v3403_v28  ;;  %v2875_v27 = vld [vmem:[#allocation4 + $0xe0] sm:$0xff] }
 0x326   :  { %1197 = vmatpush1.msra.mxu1 %v3404_v29  ;;  %1230 = vmatprep.mubr.f32.mxu1 %v3403_v28  ;;  %v2878_v29 = vld [vmem:[#allocation4 + $0xf0] sm:$0xff] }
 0x327   :  { %1260 = vmatprep.subr.mxu0 %v2793_v30  ;;  %1331 = vmatprep.subr.mxu1 %v2796_v31 }
 0x3c6   :  { %v996_v32 = vpop.f32.mrf.mxu0  ;;  %v1067_v34 = vpop.f32.mrf.mxu1 }
 0x3c7   :  { %v1072_v36 = vadd.f32 %v996_v32, %v3407_v35  ;;  %v1074_v45 = vadd.f32 %v1067_v34, %v3410_v44  ;;  %v2881_v32 = vld [vmem:[#allocation4 + $0xc8] sm:$0xff]  ;;  %v2884_v34 = vld [vmem:[#allocation4 + $0xd8] sm:$0xff]  ;;  %v2887_v35 = vld [vmem:[#allocation4 + $0xc0] sm:$0xff] }
 0x3c8   :  { %v998_v37 = vpop.f32.mrf.mxu0  ;;  %v1069_v38 = vpop.f32.mrf.mxu1  ;;  %v2911_v44 = vld [vmem:[#allocation4 + $0x80] sm:$0xff] }
 0x3c9   :  { %1961 = vtanh.f32 %v1072_v36  ;;  %v1073_v40 = vadd.f32 %v998_v37, %v3408_v39  ;;  %v1075_v43 = vadd.f32 %v1069_v38, %v3409_v41  ;;  %v2890_v36 = vld [vmem:[#allocation4 + $0xd0] sm:$0xff]  ;;  %v2893_v37 = vld [vmem:[#allocation4 + $0xa8] sm:$0xff]  ;;  %v2896_v38 = vld [vmem:[#allocation4 + $0xb8] sm:$0xff]  ;;  %3411 = vst [vmem:[#allocation11_spill] sm:$0xff] %v2911_v44 }
 0x3ca   :  { %v2899_v39 = vld [vmem:[#allocation4 + $0xa0] sm:$0xff]  ;;  %v2905_v41 = vld [vmem:[#allocation4 + $0x88] sm:$0xff] }
 0x3cb   :  { %1963 = vtanh.f32 %v1073_v40  ;;  %v2902_v40 = vld [vmem:[#allocation4 + $0xb0] sm:$0xff] }
 0x3cc   :  { %1965 = vtanh.f32 %v1075_v43  ;;  %v2908_v43 = vld [vmem:[#allocation4 + $0x98] sm:$0xff] }
 0x3cd   :  { %1967 = vtanh.f32 %v1074_v45  ;;  %v2914_v45 = vld [vmem:[#allocation4 + $0x90] sm:$0xff] }
 0x3ce   :  { %3412 = vst [vmem:[#allocation30_spill] sm:$0xff] %v2914_v45 }
 0x3d6   :  { %v1962_v46 = vpop.eup %1961 }
 0x3d7   :  { %v1080_v47 = vadd.f32 1.0, %v1962_v46  ;;  %v2917_v46 = vld [vmem:[#allocation4 + $0x68] sm:$0xff] }
 0x3d8   :  { %v1964_v48 = vpop.eup %1963  ;;  %3413 = vst [vmem:[#allocation32_spill] sm:$0xff] %v2917_v46 }
 0x3d9   :  { %v1083_v49 = vmul.f32 0.5, %v1080_v47  ;;  %v1081_v50 = vadd.f32 1.0, %v1964_v48  ;;  %v1966_v52 = vpop.eup %1965  ;;  %v2920_v47 = vld [vmem:[#allocation4 + $0x78] sm:$0xff]  ;;  %v2923_v48 = vld [vmem:[#allocation4 + $0x60] sm:$0xff] }
 0x3da   :  { %v1968_v3 = vpop.eup %1967  ;;  %3414 = vst [vmem:[#allocation33_spill] sm:$0xff] %v2920_v47  ;;  %3415 = vst [vmem:[#allocation31_spill] sm:$0xff] %v2923_v48 }
 0x3db   :  { %v1084_v53 = vmul.f32 0.5, %v1081_v50  ;;  %v1087_v54 = vmul.f32 %v1966_v52, %v1083_v49  ;;  %v1082_v9 = vadd.f32 1.0, %v1968_v3  ;;  %v2926_v49 = vld [vmem:[#allocation4 + $0x70] sm:$0xff]  ;;  %v2929_v50 = vld [vmem:[#allocation4 + $0x48] sm:$0xff]  ;;  %v2932_v52 = vld [vmem:[#allocation4 + $0x58] sm:$0xff] }
 0x3dc   :  { %3416 = vst [vmem:[#allocation12_spill] sm:$0xff] %v2926_v49  ;;  %3417 = vst [vmem:[#allocation13_spill] sm:$0xff] %v2929_v50  ;;  %v2944_v3 = vld [vmem:[#allocation4 + $0x38] sm:$0xff] }
 0x3dd   :  { %v1086_v42 = vmul.f32 %v1084_v53, %v2698_v62  ;;  %v1085_v10 = vmul.f32 0.5, %v1082_v9  ;;  %v2851_v62 = vld [vmem:[#allocation4 + $0x120] sm:$0xff]  ;;  %3418 = vst [vmem:[#allocation14_spill] sm:$0xff] %v2932_v52  ;;  %3422 = vst [vmem:[#allocation18_spill] sm:$0xff] %v2944_v3 }
 0x3de   :  { %v2935_v53 = vld [vmem:[#allocation4 + $0x40] sm:$0xff] }
 0x3df   :  { %v2804_v55 = vadd.f32 %v1087_v54, %v1086_v42  ;;  %3419 = vst [vmem:[#allocation15_spill] sm:$0xff] %v2935_v53  ;;  %v2938_v54 = vld [vmem:[#allocation4 + $0x50] sm:$0xff]  ;;  %v2941_v42 = vld [vmem:[#allocation4 + $0x28] sm:$0xff]  ;;  %v2947_v9 = vld [vmem:[#allocation4 + $0x20] sm:$0xff] }
 0x3e0   :  { %3420 = vst [vmem:[#allocation16_spill] sm:$0xff] %v2938_v54  ;;  %3421 = vst [vmem:[#allocation17_spill] sm:$0xff] %v2941_v42 }
 0x3e1   :  { %1969 = vtanh.f32 %v2804_v55  ;;  %3423 = vst [vmem:[#allocation19_spill] sm:$0xff] %v2947_v9 }
 0x3ee   :  { %v1970_v11 = vpop.eup %1969 }
 0x3ef   :  { %v1090_v12 = vmul.f32 %v1970_v11, %v1085_v10  ;;  %v2950_v10 = vld [vmem:[#allocation4 + $0x30] sm:$0xff]  ;;  %v2953_v11 = vld [vmem:[#allocation4 + $0x8] sm:$0xff] }
 0x3f0   :  { %3424 = vst [vmem:[#allocation20_spill] sm:$0xff] %v2950_v10  ;;  %3425 = vst [vmem:[#allocation21_spill] sm:$0xff] %v2953_v11 }
 0x3f1   :  { %1160 = vmatmul.mubr.f32.vlgmr.msra.gmra.mxu0 %v1090_v12  ;;  %1231 = vmatmul.mubr.f32.vlgmr.msra.gmra.mxu1 %v1090_v12  ;;  %v2956_v12 = vld [vmem:[#allocation4 + $0x18] sm:$0xff] }
 0x3f2   :  { %1261 = vmatpush1.msra.mxu0 %v2701_v63  ;;  %1332 = vmatpush1.msra.mxu1 %v2704_v1  ;;  %3426 = vst [vmem:[#allocation22_spill] sm:$0xff] %v2956_v12 }
 0x3f3   :  { %1262 = vmatprep.subr.mxu0 %v2707_v6  ;;  %1333 = vmatprep.subr.mxu1 %v2710_v0 }
 0x3f4   :  { %1263 = vmatpush1.msra.mxu0 %v2713_v51  ;;  %1334 = vmatpush1.msra.mxu1 %v2716_v60 }
 0x3f5   :  { %1264 = vmatprep.subr.mxu0 %v2719_v58  ;;  %1335 = vmatprep.subr.mxu1 %v2722_v57 }
 0x3f6   :  { %1265 = vmatpush1.msra.mxu0 %v2725_v5  ;;  %1336 = vmatpush1.msra.mxu1 %v2728_v24 }
 0x3f7   :  { %1266 = vmatprep.subr.mxu0 %v2731_v59  ;;  %1337 = vmatprep.subr.mxu1 %v2734_v15 }
 0x3f8   :  { %1267 = vmatpush1.msra.mxu0 %v2737_v56  ;;  %1338 = vmatpush1.msra.mxu1 %v2740_v33 }
 0x3f9   :  { %1268 = vmatprep.subr.mxu0 %v2821_v13  ;;  %1339 = vmatprep.subr.mxu1 %v2824_v14 }
 0x3fa   :  { %1269 = vmatpush1.msra.mxu0 %v2827_v16  ;;  %1340 = vmatpush1.msra.mxu1 %v2830_v17 }
 0x3fb   :  { %1270 = vmatprep.subr.mxu0 %v2833_v18  ;;  %1341 = vmatprep.subr.mxu1 %v2836_v19 }
 0x3fc   :  { %1271 = vmatpush1.msra.mxu0 %v2839_v20  ;;  %1342 = vmatpush1.msra.mxu1 %v2842_v21 }
 0x3fd   :  { %1272 = vmatprep.subr.mxu0 %v2845_v22  ;;  %1343 = vmatprep.subr.mxu1 %v2848_v23 }
 0x3fe   :  { %1273 = vmatpush1.msra.mxu0 %v2851_v62  ;;  %1344 = vmatpush1.msra.mxu1 %v2854_v8 }
 0x3ff   :  { %1274 = vmatprep.subr.mxu0 %v2857_v4  ;;  %1345 = vmatprep.subr.mxu1 %v2860_v2 }
 0x400   :  { %1275 = vmatpush1.msra.mxu0 %v2863_v61  ;;  %1346 = vmatpush1.msra.mxu1 %v2866_v7 }
 0x401   :  { %1276 = vmatprep.subr.mxu0 %v2869_v25  ;;  %1347 = vmatprep.subr.mxu1 %v2872_v26 }
 0x402   :  { %1277 = vmatpush1.msra.mxu0 %v2875_v27  ;;  %1348 = vmatpush1.msra.mxu1 %v2878_v29 }
 0x403   :  { %1278 = vmatprep.subr.mxu0 %v2881_v32  ;;  %1349 = vmatprep.subr.mxu1 %v2884_v34 }
 0x404   :  { %1279 = vmatpush1.msra.mxu0 %v2887_v35  ;;  %1350 = vmatpush1.msra.mxu1 %v2890_v36 }
 0x405   :  { %1280 = vmatprep.subr.mxu0 %v2893_v37  ;;  %1351 = vmatprep.subr.mxu1 %v2896_v38 }
 0x406   :  { %1281 = vmatpush1.msra.mxu0 %v2899_v39  ;;  %1352 = vmatpush1.msra.mxu1 %v2902_v40 }
 0x407   :  { %1282 = vmatprep.subr.mxu0 %v2905_v41  ;;  %1353 = vmatprep.subr.mxu1 %v2908_v43 }
 0x408   :  { %1283 = vmatpush1.msra.mxu0 %v2911_v44  ;;  %1354 = vmatpush1.msra.mxu1 %v2914_v45 }
 0x409   :  { %1284 = vmatprep.subr.mxu0 %v2917_v46  ;;  %1355 = vmatprep.subr.mxu1 %v2920_v47 }
 0x40a   :  { %1285 = vmatpush1.msra.mxu0 %v2923_v48  ;;  %1356 = vmatpush1.msra.mxu1 %v2926_v49 }
 0x40b   :  { %1286 = vmatprep.subr.mxu0 %v2929_v50  ;;  %1357 = vmatprep.subr.mxu1 %v2932_v52  ;;  %v3431_v50 = vld [vmem:[#allocation45_spill] sm:$0xff] }
 0x40c   :  { %1287 = vmatpush1.msra.mxu0 %v2935_v53  ;;  %1358 = vmatpush1.msra.mxu1 %v2938_v54 }
 0x40d   :  { %1288 = vmatprep.subr.mxu0 %v2941_v42  ;;  %1359 = vmatprep.subr.mxu1 %v2944_v3  ;;  %v2959_v42 = vld [vmem:[#allocation4] sm:$0xff]  ;;  %v2963_v3 = vld [vmem:[#allocation4 + $0x10] sm:$0xff] }
 0x40e   :  { %1289 = vmatpush1.msra.mxu0 %v2947_v9  ;;  %1360 = vmatpush1.msra.mxu1 %v2950_v10  ;;  %3427 = vst [vmem:[#allocation23_spill] sm:$0xff] %v2959_v42  ;;  %3428 = vst [vmem:[#allocation24_spill] sm:$0xff] %v2963_v3  ;;  %v3429_v9 = vld [vmem:[#allocation42_spill] sm:$0xff] }
 0x40f   :  { %1290 = vmatprep.subr.mxu0 %v2953_v11  ;;  %1361 = vmatprep.subr.mxu1 %v2956_v12 }
 0x410   :  { %1291 = vmatpush1.msra.mxu0 %v2959_v42  ;;  %1324 = vmatprep.mubr.f32.mxu0 %v3403_v28  ;;  %v3430_v42 = vld [vmem:[#allocation44_spill] sm:$0xff] }
 0x411   :  { %1362 = vmatpush1.msra.mxu1 %v2963_v3  ;;  %1395 = vmatprep.mubr.f32.mxu1 %v3403_v28  ;;  %v3432_v3 = vld [vmem:[#allocation43_spill] sm:$0xff] }
 0x412   :  { %1425 = vmatprep.subr.mxu0 %v2793_v30  ;;  %1496 = vmatprep.subr.mxu1 %v2796_v31 }
 0x4b1   :  { %v1161_v11 = vpop.f32.mrf.mxu0  ;;  %v1232_v10 = vpop.f32.mrf.mxu1 }
 0x4b2   :  { %v1237_v12 = vadd.f32 %v1161_v11, %v3429_v9  ;;  %v1239_v48 = vadd.f32 %v1232_v10, %v3432_v3  ;;  %v3443_v3 = vld [vmem:[#allocation17_spill] sm:$0xff]  ;;  %v3444_v10 = vld [vmem:[#allocation18_spill] sm:$0xff] }
 0x4b3   :  { %v1163_v54 = vpop.f32.mrf.mxu0  ;;  %v1234_v53 = vpop.f32.mrf.mxu1 }
 0x4b4   :  { %1971 = vtanh.f32 %v1237_v12  ;;  %v1238_v52 = vadd.f32 %v1163_v54, %v3430_v42  ;;  %v1240_v49 = vadd.f32 %v1234_v53, %v3431_v50  ;;  %v3442_v42 = vld [vmem:[#allocation16_spill] sm:$0xff] }
 0x4b6   :  { %1973 = vtanh.f32 %v1238_v52 }
 0x4b7   :  { %1975 = vtanh.f32 %v1240_v49 }
 0x4b8   :  { %1977 = vtanh.f32 %v1239_v48  ;;  %v3441_v48 = vld [vmem:[#allocation15_spill] sm:$0xff] }
 0x4c1   :  { %v1972_v28 = vpop.eup %1971 }
 0x4c2   :  { %v1245_v47 = vadd.f32 1.0, %v1972_v28  ;;  %v3433_v28 = vld [vmem:[#allocation11_spill] sm:$0xff] }
 0x4c3   :  { %v1974_v30 = vpop.eup %1973 }
 0x4c4   :  { %v1248_v46 = vmul.f32 0.5, %v1245_v47  ;;  %v1246_v31 = vadd.f32 1.0, %v1974_v30  ;;  %v1976_v45 = vpop.eup %1975  ;;  %v3434_v30 = vld [vmem:[#allocation30_spill] sm:$0xff] }
 0x4c5   :  { %v1978_v50 = vpop.eup %1977  ;;  %v3440_v47 = vld [vmem:[#allocation14_spill] sm:$0xff] }
 0x4c6   :  { %v1249_v44 = vmul.f32 0.5, %v1246_v31  ;;  %v1252_v9 = vmul.f32 %v1976_v45, %v1248_v46  ;;  %v1247_v52 = vadd.f32 1.0, %v1978_v50  ;;  %v3435_v31 = vld [vmem:[#allocation32_spill] sm:$0xff]  ;;  %v3439_v46 = vld [vmem:[#allocation13_spill] sm:$0xff] }
 0x4c7   :  { %v3438_v45 = vld [vmem:[#allocation12_spill] sm:$0xff]  ;;  %v3447_v50 = vld [vmem:[#allocation21_spill] sm:$0xff] }
 0x4c8   :  { %v1251_v11 = vmul.f32 %v1249_v44, %v2804_v55  ;;  %v1250_v49 = vmul.f32 0.5, %v1247_v52  ;;  %v3436_v55 = vld [vmem:[#allocation33_spill] sm:$0xff]  ;;  %v3437_v44 = vld [vmem:[#allocation31_spill] sm:$0xff]  ;;  %v3448_v52 = vld [vmem:[#allocation22_spill] sm:$0xff] }
 0x4ca   :  { %v2974_v12 = vadd.f32 %v1252_v9, %v1251_v11  ;;  %v3445_v9 = vld [vmem:[#allocation19_spill] sm:$0xff]  ;;  %v3446_v11 = vld [vmem:[#allocation20_spill] sm:$0xff] }
 0x4cc   :  { %1979 = vtanh.f32 %v2974_v12 }
 0x4d9   :  { %v1980_v53 = vpop.eup %1979 }
 0x4da   :  { %v1255_v54 = vmul.f32 %v1980_v53, %v1250_v49  ;;  %v3449_v49 = vld [vmem:[#allocation23_spill] sm:$0xff]  ;;  %v3450_v53 = vmov 0.0  }
 0x4dc   :  { %1325 = vmatmul.mubr.f32.vlgmr.msra.gmra.mxu0 %v1255_v54  ;;  %1396 = vmatmul.mubr.f32.vlgmr.msra.gmra.mxu1 %v1255_v54  ;;  %v3451_v54 = vld [vmem:[#allocation24_spill] sm:$0xff] }
 0x4dd   :  { %1426 = vmatpush1.msra.mxu0 %v2701_v63  ;;  %1497 = vmatpush1.msra.mxu1 %v2704_v1 }
 0x4de   :  { %1427 = vmatprep.subr.mxu0 %v2707_v6  ;;  %1498 = vmatprep.subr.mxu1 %v2710_v0 }
 0x4df   :  { %1428 = vmatpush1.msra.mxu0 %v2713_v51  ;;  %1499 = vmatpush1.msra.mxu1 %v2716_v60 }
 0x4e0   :  { %1429 = vmatprep.subr.mxu0 %v2719_v58  ;;  %1500 = vmatprep.subr.mxu1 %v2722_v57 }
 0x4e1   :  { %1430 = vmatpush1.msra.mxu0 %v2725_v5  ;;  %1501 = vmatpush1.msra.mxu1 %v2728_v24 }
 0x4e2   :  { %1431 = vmatprep.subr.mxu0 %v2731_v59  ;;  %1502 = vmatprep.subr.mxu1 %v2734_v15 }
 0x4e3   :  { %1432 = vmatpush1.msra.mxu0 %v2737_v56  ;;  %1503 = vmatpush1.msra.mxu1 %v2740_v33 }
 0x4e4   :  { %1433 = vmatprep.subr.mxu0 %v2821_v13  ;;  %1504 = vmatprep.subr.mxu1 %v2824_v14 }
 0x4e5   :  { %1434 = vmatpush1.msra.mxu0 %v2827_v16  ;;  %1505 = vmatpush1.msra.mxu1 %v2830_v17 }
 0x4e6   :  { %1435 = vmatprep.subr.mxu0 %v2833_v18  ;;  %1506 = vmatprep.subr.mxu1 %v2836_v19 }
 0x4e7   :  { %1436 = vmatpush1.msra.mxu0 %v2839_v20  ;;  %1507 = vmatpush1.msra.mxu1 %v2842_v21 }
 0x4e8   :  { %1437 = vmatprep.subr.mxu0 %v2845_v22  ;;  %1508 = vmatprep.subr.mxu1 %v2848_v23 }
 0x4e9   :  { %1438 = vmatpush1.msra.mxu0 %v2851_v62  ;;  %1509 = vmatpush1.msra.mxu1 %v2854_v8 }
 0x4ea   :  { %1439 = vmatprep.subr.mxu0 %v2857_v4  ;;  %1510 = vmatprep.subr.mxu1 %v2860_v2 }
 0x4eb   :  { %1440 = vmatpush1.msra.mxu0 %v2863_v61  ;;  %1511 = vmatpush1.msra.mxu1 %v2866_v7 }
 0x4ec   :  { %1441 = vmatprep.subr.mxu0 %v2869_v25  ;;  %1512 = vmatprep.subr.mxu1 %v2872_v26 }
 0x4ed   :  { %1442 = vmatpush1.msra.mxu0 %v2875_v27  ;;  %1513 = vmatpush1.msra.mxu1 %v2878_v29 }
 0x4ee   :  { %1443 = vmatprep.subr.mxu0 %v2881_v32  ;;  %1514 = vmatprep.subr.mxu1 %v2884_v34 }
 0x4ef   :  { %1444 = vmatpush1.msra.mxu0 %v2887_v35  ;;  %1515 = vmatpush1.msra.mxu1 %v2890_v36 }
 0x4f0   :  { %1445 = vmatprep.subr.mxu0 %v2893_v37  ;;  %1516 = vmatprep.subr.mxu1 %v2896_v38 }
 0x4f1   :  { %1446 = vmatpush1.msra.mxu0 %v2899_v39  ;;  %1517 = vmatpush1.msra.mxu1 %v2902_v40 }
 0x4f2   :  { %1447 = vmatprep.subr.mxu0 %v2905_v41  ;;  %1518 = vmatprep.subr.mxu1 %v2908_v43 }
 0x4f3   :  { %1448 = vmatpush1.msra.mxu0 %v3433_v28  ;;  %1519 = vmatpush1.msra.mxu1 %v3434_v30 }
 0x4f4   :  { %1449 = vmatprep.subr.mxu0 %v3435_v31  ;;  %1520 = vmatprep.subr.mxu1 %v3436_v55 }
 0x4f5   :  { %1450 = vmatpush1.msra.mxu0 %v3437_v44  ;;  %1521 = vmatpush1.msra.mxu1 %v3438_v45 }
 0x4f6   :  { %1451 = vmatprep.subr.mxu0 %v3439_v46  ;;  %1522 = vmatprep.subr.mxu1 %v3440_v47 }
 0x4f7   :  { %1452 = vmatpush1.msra.mxu0 %v3441_v48  ;;  %1523 = vmatpush1.msra.mxu1 %v3442_v42  ;;  %v3452_v42 = vld [vmem:[#allocation9_spill] sm:$0xff]  ;;  %v3454_v48 = vld [vmem:[#allocation46_spill] sm:$0xff] }
 0x4f8   :  { %1453 = vmatprep.subr.mxu0 %v3443_v3  ;;  %1524 = vmatprep.subr.mxu1 %v3444_v10  ;;  %v3453_v3 = vld [vmem:[#allocation10_spill] sm:$0xff] }
 0x4f9   :  { %1454 = vmatpush1.msra.mxu0 %v3445_v9  ;;  %1525 = vmatpush1.msra.mxu1 %v3446_v11 }
 0x4fa   :  { %1455 = vmatprep.subr.mxu0 %v3447_v50  ;;  %1526 = vmatprep.subr.mxu1 %v3448_v52  ;;  %v3455_v52 = vld [vmem:[#allocation48_spill] sm:$0xff] }
 0x4fb   :  { %1456 = vmatpush1.msra.mxu0 %v3449_v49  ;;  %1489 = vmatprep.mubr.f32.mxu0 %v3450_v53  ;;  %v3456_v49 = vld [vmem:[#allocation49_spill] sm:$0xff] }
 0x4fc   :  { %1527 = vmatpush1.msra.mxu1 %v3451_v54  ;;  %1560 = vmatprep.mubr.f32.mxu1 %v3450_v53  ;;  %v3457_v54 = vld [vmem:[#allocation47_spill] sm:$0xff] }
 0x4fd   :  { %1590 = vmatprep.subr.mxu0 %v3452_v42  ;;  %1661 = vmatprep.subr.mxu1 %v3453_v3 }
 0x59c   :  { %v1326_v10 = vpop.f32.mrf.mxu0  ;;  %v1397_v9 = vpop.f32.mrf.mxu1 }
 0x59d   :  { %v1402_v11 = vadd.f32 %v1326_v10, %v3454_v48  ;;  %v1404_v44 = vadd.f32 %v1397_v9, %v3457_v54  ;;  %v1759_v54 = vld [vmem:[%s3200_s4 + $0x40] sm:$0xff] }
 0x59e   :  { %v1328_v47 = vpop.f32.mrf.mxu0  ;;  %v1399_v50 = vpop.f32.mrf.mxu1 }
 0x59f   :  { %1981 = vtanh.f32 %v1402_v11  ;;  %v1403_v46 = vadd.f32 %v1328_v47, %v3455_v52  ;;  %v1405_v45 = vadd.f32 %v1399_v50, %v3456_v49  ;;  %v1762_v52 = vld [vmem:[%s3200_s4 + $0x58] sm:$0xff]  ;;  %v1761_v49 = vld [vmem:[%s3200_s4 + $0x50] sm:$0xff] }
 0x5a1   :  { %1983 = vtanh.f32 %v1403_v46 }
 0x5a2   :  { %1985 = vtanh.f32 %v1405_v45 }
 0x5a3   :  { %1987 = vtanh.f32 %v1404_v44  ;;  %v1763_v44 = vld [vmem:[%s3200_s4 + $0x60] sm:$0xff] }
 0x5ac   :  { %v1982_v53 = vpop.eup %1981 }
 0x5ad   :  { %v1410_v55 = vadd.f32 1.0, %v1982_v53  ;;  %v1760_v53 = vld [vmem:[%s3200_s4 + $0x48] sm:$0xff] }
 0x5ae   :  { %v1984_v42 = vpop.eup %1983 }
 0x5af   :  { %v1413_v31 = vmul.f32 0.5, %v1410_v55  ;;  %v1411_v3 = vadd.f32 1.0, %v1984_v42  ;;  %v1986_v30 = vpop.eup %1985  ;;  %v1764_v55 = vld [vmem:[%s3200_s4 + $0x68] sm:$0xff]  ;;  %v1758_v42 = vld [vmem:[%s3200_s4 + $0x38] sm:$0xff] }
 0x5b0   :  { %v1988_v47 = vpop.eup %1987 }
 0x5b1   :  { %v1414_v28 = vmul.f32 0.5, %v1411_v3  ;;  %v1417_v48 = vmul.f32 %v1986_v30, %v1413_v31  ;;  %v1412_v46 = vadd.f32 1.0, %v1988_v47  ;;  %v1766_v30 = vld [vmem:[%s3200_s4 + $0x78] sm:$0xff]  ;;  %v1765_v31 = vld [vmem:[%s3200_s4 + $0x70] sm:$0xff] }
 0x5b2   :  { %v1757_v3 = vld [vmem:[%s3200_s4 + $0x30] sm:$0xff] }
 0x5b3   :  { %v1416_v10 = vmul.f32 %v1414_v28, %v2974_v12  ;;  %v1415_v45 = vmul.f32 0.5, %v1412_v46  ;;  %v1753_v47 = vld [vmem:[%s3200_s4 + $0x10] sm:$0xff]  ;;  %v1752_v46 = vld [vmem:[%s3200_s4 + $0x8] sm:$0xff] }
 0x5b5   :  { %v3048_v11 = vadd.f32 %v1417_v48, %v1416_v10  ;;  %v1756_v48 = vld [vmem:[%s3200_s4 + $0x28] sm:$0xff]  ;;  %v1755_v10 = vld [vmem:[%s3200_s4 + $0x20] sm:$0xff] }
 0x5b7   :  { %1989 = vtanh.f32 %v3048_v11 }
 0x5c4   :  { %v1990_v50 = vpop.eup %1989 }
 0x5c5   :  { %v1420_v9 = vmul.f32 %v1990_v50, %v1415_v45  ;;  %v1751_v45 = vld [vmem:[%s3200_s4] sm:$0xff] }
 0x5c7   :  { %1490 = vmatmul.mubr.f32.vlgmr.msra.gmra.mxu0 %v1420_v9  ;;  %1561 = vmatmul.mubr.f32.vlgmr.msra.gmra.mxu1 %v1420_v9 }
 0x5c8   :  { %1591 = vmatpush1.msra.mxu0 %v2701_v63  ;;  %1662 = vmatpush1.msra.mxu1 %v2704_v1  ;;  %v3458_v63 = vld [vmem:[#allocation11_spill] sm:$0xff]  ;;  %v3459_v1 = vld [vmem:[#allocation30_spill] sm:$0xff] }
 0x5c9   :  { %1592 = vmatprep.subr.mxu0 %v2707_v6  ;;  %1663 = vmatprep.subr.mxu1 %v2710_v0  ;;  %v3460_v6 = vld [vmem:[#allocation32_spill] sm:$0xff]  ;;  %v3461_v0 = vld [vmem:[#allocation33_spill] sm:$0xff] }
 0x5ca   :  { %1593 = vmatpush1.msra.mxu0 %v2713_v51  ;;  %1664 = vmatpush1.msra.mxu1 %v2716_v60  ;;  %v3462_v51 = vld [vmem:[#allocation31_spill] sm:$0xff]  ;;  %v3463_v60 = vld [vmem:[#allocation12_spill] sm:$0xff] }
 0x5cb   :  { %1594 = vmatprep.subr.mxu0 %v2719_v58  ;;  %1665 = vmatprep.subr.mxu1 %v2722_v57  ;;  %v3464_v58 = vld [vmem:[#allocation13_spill] sm:$0xff]  ;;  %v3465_v57 = vld [vmem:[#allocation14_spill] sm:$0xff] }
 0x5cc   :  { %1595 = vmatpush1.msra.mxu0 %v2725_v5  ;;  %1666 = vmatpush1.msra.mxu1 %v2728_v24  ;;  %v3466_v5 = vld [vmem:[#allocation15_spill] sm:$0xff]  ;;  %v3467_v24 = vld [vmem:[#allocation16_spill] sm:$0xff] }
 0x5cd   :  { %1596 = vmatprep.subr.mxu0 %v2731_v59  ;;  %1667 = vmatprep.subr.mxu1 %v2734_v15  ;;  %v3468_v59 = vld [vmem:[#allocation17_spill] sm:$0xff]  ;;  %v3469_v15 = vld [vmem:[#allocation18_spill] sm:$0xff] }
 0x5ce   :  { %1597 = vmatpush1.msra.mxu0 %v2737_v56  ;;  %1668 = vmatpush1.msra.mxu1 %v2740_v33  ;;  %v3470_v56 = vld [vmem:[#allocation19_spill] sm:$0xff]  ;;  %v3471_v33 = vld [vmem:[#allocation20_spill] sm:$0xff] }
 0x5cf   :  { %1598 = vmatprep.subr.mxu0 %v2821_v13  ;;  %1669 = vmatprep.subr.mxu1 %v2824_v14  ;;  %v3472_v13 = vld [vmem:[#allocation21_spill] sm:$0xff]  ;;  %v3473_v14 = vld [vmem:[#allocation22_spill] sm:$0xff] }
 0x5d0   :  { %1599 = vmatpush1.msra.mxu0 %v2827_v16  ;;  %1670 = vmatpush1.msra.mxu1 %v2830_v17  ;;  %v3474_v16 = vld [vmem:[#allocation23_spill] sm:$0xff]  ;;  %v3475_v17 = vmov 0.0  }
 0x5d1   :  { %1600 = vmatprep.subr.mxu0 %v2833_v18  ;;  %1671 = vmatprep.subr.mxu1 %v2836_v19  ;;  %v3476_v18 = vld [vmem:[#allocation24_spill] sm:$0xff] }
 0x5d2   :  { %1601 = vmatpush1.msra.mxu0 %v2839_v20  ;;  %1672 = vmatpush1.msra.mxu1 %v2842_v21  ;;  %v3477_v21 = vld [vmem:[#allocation50_spill] sm:$0xff] }
 0x5d3   :  { %1602 = vmatprep.subr.mxu0 %v2845_v22  ;;  %1673 = vmatprep.subr.mxu1 %v2848_v23 }
 0x5d4   :  { %1603 = vmatpush1.msra.mxu0 %v2851_v62  ;;  %1674 = vmatpush1.msra.mxu1 %v2854_v8  ;;  %v3478_v8 = vld [vmem:[#allocation52_spill] sm:$0xff] }
 0x5d5   :  { %1604 = vmatprep.subr.mxu0 %v2857_v4  ;;  %1675 = vmatprep.subr.mxu1 %v2860_v2  ;;  %v3479_v2 = vld [vmem:[#allocation53_spill] sm:$0xff] }
 0x5d6   :  { %1605 = vmatpush1.msra.mxu0 %v2863_v61  ;;  %1676 = vmatpush1.msra.mxu1 %v2866_v7  ;;  %v3480_v7 = vld [vmem:[#allocation51_spill] sm:$0xff] }
 0x5d7   :  { %1606 = vmatprep.subr.mxu0 %v2869_v25  ;;  %1677 = vmatprep.subr.mxu1 %v2872_v26 }
 0x5d8   :  { %1607 = vmatpush1.msra.mxu0 %v2875_v27  ;;  %1678 = vmatpush1.msra.mxu1 %v2878_v29 }
 0x5d9   :  { %1608 = vmatprep.subr.mxu0 %v2881_v32  ;;  %1679 = vmatprep.subr.mxu1 %v2884_v34 }
 0x5da   :  { %1609 = vmatpush1.msra.mxu0 %v2887_v35  ;;  %1680 = vmatpush1.msra.mxu1 %v2890_v36 }
 0x5db   :  { %1610 = vmatprep.subr.mxu0 %v2893_v37  ;;  %1681 = vmatprep.subr.mxu1 %v2896_v38 }
 0x5dc   :  { %1611 = vmatpush1.msra.mxu0 %v2899_v39  ;;  %1682 = vmatpush1.msra.mxu1 %v2902_v40 }
 0x5dd   :  { %1612 = vmatprep.subr.mxu0 %v2905_v41  ;;  %1683 = vmatprep.subr.mxu1 %v2908_v43 }
 0x5de   :  { %1613 = vmatpush1.msra.mxu0 %v3458_v63  ;;  %1684 = vmatpush1.msra.mxu1 %v3459_v1  ;;  %v3481_v63 = vld [vmem:[#allocation54_spill] sm:$0xff] }
 0x5df   :  { %1614 = vmatprep.subr.mxu0 %v3460_v6  ;;  %1685 = vmatprep.subr.mxu1 %v3461_v0 }
 0x5e0   :  { %1615 = vmatpush1.msra.mxu0 %v3462_v51  ;;  %1686 = vmatpush1.msra.mxu1 %v3463_v60  ;;  %v3482_v51 = vld [vmem:[#allocation56_spill] sm:$0xff] }
 0x5e1   :  { %1616 = vmatprep.subr.mxu0 %v3464_v58  ;;  %1687 = vmatprep.subr.mxu1 %v3465_v57  ;;  %v3483_v58 = vld [vmem:[#allocation57_spill] sm:$0xff] }
 0x5e2   :  { %1617 = vmatpush1.msra.mxu0 %v3466_v5  ;;  %1688 = vmatpush1.msra.mxu1 %v3467_v24  ;;  %v3484_v5 = vld [vmem:[#allocation55_spill] sm:$0xff] }
 0x5e3   :  { %1618 = vmatprep.subr.mxu0 %v3468_v59  ;;  %1689 = vmatprep.subr.mxu1 %v3469_v15 }
 0x5e4   :  { %1619 = vmatpush1.msra.mxu0 %v3470_v56  ;;  %1690 = vmatpush1.msra.mxu1 %v3471_v33 }
 0x5e5   :  { %1620 = vmatprep.subr.mxu0 %v3472_v13  ;;  %1691 = vmatprep.subr.mxu1 %v3473_v14 }
 0x5e6   :  { %1621 = vmatpush1.msra.mxu0 %v3474_v16  ;;  %1654 = vmatprep.mubr.f32.mxu0 %v3475_v17 }
 0x5e7   :  { %1692 = vmatpush1.msra.mxu1 %v3476_v18  ;;  %1725 = vmatprep.mubr.f32.mxu1 %v3475_v17 }
 0x5e8   :  { %1889 = vmatprep.subr.mxu0 %v3475_v17 }
 0x687   :  { %v1491_v19 = vpop.f32.mrf.mxu0  ;;  %v1562_v20 = vpop.f32.mrf.mxu1 }
 0x688   :  { %v1567_v22 = vadd.f32 %v1491_v19, %v3477_v21  ;;  %v1569_v25 = vadd.f32 %v1562_v20, %v3480_v7 }
 0x689   :  { %v1493_v23 = vpop.f32.mrf.mxu0  ;;  %v1564_v62 = vpop.f32.mrf.mxu1 }
 0x68a   :  { %1991 = vtanh.f32 %v1567_v22  ;;  %v1568_v4 = vadd.f32 %v1493_v23, %v3478_v8  ;;  %v1570_v61 = vadd.f32 %v1564_v62, %v3479_v2  ;;  %v1871_v8 = vld [vmem:[#allocation3] ss:$0 sm:$0xff] }
 0x68c   :  { %1993 = vtanh.f32 %v1568_v4 }
 0x68d   :  { %1995 = vtanh.f32 %v1570_v61 }
 0x68e   :  { %1997 = vtanh.f32 %v1569_v25 }
 0x697   :  { %v1992_v26 = vpop.eup %1991 }
 0x698   :  { %v1575_v27 = vadd.f32 1.0, %v1992_v26 }
 0x699   :  { %v1994_v29 = vpop.eup %1993 }
 0x69a   :  { %v1578_v32 = vmul.f32 0.5, %v1575_v27  ;;  %v1576_v34 = vadd.f32 1.0, %v1994_v29  ;;  %v1996_v35 = vpop.eup %1995 }
 0x69b   :  { %v1998_v40 = vpop.eup %1997 }
 0x69c   :  { %v1579_v36 = vmul.f32 0.5, %v1576_v34  ;;  %v1582_v37 = vmul.f32 %v1996_v35, %v1578_v32  ;;  %v1577_v41 = vadd.f32 1.0, %v1998_v40 }
 0x69e   :  { %v1581_v38 = vmul.f32 %v1579_v36, %v3048_v11  ;;  %v1580_v43 = vmul.f32 0.5, %v1577_v41  ;;  %v1754_v11 = vld [vmem:[%s3200_s4 + $0x18] sm:$0xff] }
 0x6a0   :  { %v3121_v39 = vadd.f32 %v1582_v37, %v1581_v38 }
 0x6a2   :  { %1999 = vtanh.f32 %v3121_v39 }
 0x6af   :  { %v2000_v12 = vpop.eup %1999 }
 0x6b0   :  { %v1585_v28 = vmul.f32 %v2000_v12, %v1580_v43 }
 0x6b2   :  { %1655 = vmatmul.mubr.f32.vlgmr.msra.gmra.mxu0 %v1585_v28  ;;  %1726 = vmatmul.mubr.f32.vlgmr.msra.gmra.mxu1 %v1585_v28 }
 0x6b3   :  { %1890 = vmatpush3.msra.mxu0 %v1766_v30  ;;  %1921 = vmatprep.mubr.msk.f32.mxu0 %vm2101_vm2, %v3475_v17 }
 0x6b4   :  { %1891 = vmatprep.subr.mxu0 %v3475_v17 }
 0x6b5   :  { %1892 = vmatpush3.msra.mxu0 %v1765_v31 }
 0x6b6   :  { %1893 = vmatprep.subr.mxu0 %v3475_v17 }
 0x6b7   :  { %1894 = vmatpush3.msra.mxu0 %v1764_v55 }
 0x6b8   :  { %1895 = vmatprep.subr.mxu0 %v3475_v17 }
 0x6b9   :  { %1896 = vmatpush3.msra.mxu0 %v1763_v44 }
 0x6ba   :  { %1897 = vmatprep.subr.mxu0 %v3475_v17 }
 0x6bb   :  { %1898 = vmatpush3.msra.mxu0 %v1762_v52 }
 0x6bc   :  { %1899 = vmatprep.subr.mxu0 %v3475_v17 }
 0x6bd   :  { %1900 = vmatpush3.msra.mxu0 %v1761_v49 }
 0x6be   :  { %1901 = vmatprep.subr.mxu0 %v3475_v17 }
 0x6bf   :  { %1902 = vmatpush3.msra.mxu0 %v1760_v53 }
 0x6c0   :  { %1903 = vmatprep.subr.mxu0 %v3475_v17 }
 0x6c1   :  { %1904 = vmatpush3.msra.mxu0 %v1759_v54 }
 0x6c2   :  { %1905 = vmatprep.subr.mxu0 %v3475_v17 }
 0x6c3   :  { %1906 = vmatpush3.msra.mxu0 %v1758_v42 }
 0x6c4   :  { %1907 = vmatprep.subr.mxu0 %v3475_v17 }
 0x6c5   :  { %1908 = vmatpush3.msra.mxu0 %v1757_v3 }
 0x6c6   :  { %1909 = vmatprep.subr.mxu0 %v3475_v17 }
 0x6c7   :  { %1910 = vmatpush3.msra.mxu0 %v1756_v48 }
 0x6c8   :  { %1911 = vmatprep.subr.mxu0 %v3475_v17 }
 0x6c9   :  { %1912 = vmatpush3.msra.mxu0 %v1755_v10 }
 0x6ca   :  { %1913 = vmatprep.subr.mxu0 %v3475_v17 }
 0x6cb   :  { %1914 = vmatpush3.msra.mxu0 %v1754_v11 }
 0x6cc   :  { %1915 = vmatprep.subr.mxu0 %v3475_v17 }
 0x6cd   :  { %1916 = vmatpush3.msra.mxu0 %v1753_v47 }
 0x6ce   :  { %1917 = vmatprep.subr.mxu0 %v3475_v17 }
 0x6cf   :  { %1918 = vmatpush3.msra.mxu0 %v1752_v46 }
 0x6d0   :  { %1919 = vmatprep.subr.mxu0 %v3475_v17 }
 0x6d1   :  { %1920 = vmatpush3.msra.mxu0 %v1751_v45 }
 0x772   :  { %v1656_v50 = vpop.f32.mrf.mxu0  ;;  %v1727_v9 = vpop.f32.mrf.mxu1 }
 0x773   :  { %v1732_v1 = vadd.f32 %v1656_v50, %v3481_v63  ;;  %v1734_v24 = vadd.f32 %v1727_v9, %v3484_v5 }
 0x774   :  { %v1658_v6 = vpop.f32.mrf.mxu0  ;;  %v1729_v0 = vpop.f32.mrf.mxu1 }
 0x775   :  { %2001 = vtanh.f32 %v1732_v1  ;;  %v1733_v60 = vadd.f32 %v1658_v6, %v3482_v51  ;;  %v1735_v57 = vadd.f32 %v1729_v0, %v3483_v58 }
 0x777   :  { %2003 = vtanh.f32 %v1733_v60 }
 0x778   :  { %2005 = vtanh.f32 %v1735_v57 }
 0x779   :  { %2007 = vtanh.f32 %v1734_v24 }
 0x782   :  { %v2002_v59 = vpop.eup %2001 }
 0x783   :  { %v1740_v15 = vadd.f32 1.0, %v2002_v59 }
 0x784   :  { %v2004_v56 = vpop.eup %2003 }
 0x785   :  { %v1743_v33 = vmul.f32 0.5, %v1740_v15  ;;  %v1741_v13 = vadd.f32 1.0, %v2004_v56  ;;  %v2006_v14 = vpop.eup %2005 }
 0x786   :  { %v2008_v20 = vpop.eup %2007 }
 0x787   :  { %v1744_v16 = vmul.f32 0.5, %v1741_v13  ;;  %v1747_v17 = vmul.f32 %v2006_v14, %v1743_v33  ;;  %v1742_v21 = vadd.f32 1.0, %v2008_v20 }
 0x789   :  { %v1746_v18 = vmul.f32 %v1744_v16, %v3121_v39  ;;  %v1745_v22 = vmul.f32 0.5, %v1742_v21 }
 0x78b   :  { %v1748_v19 = vadd.f32 %v1747_v17, %v1746_v18 }
 0x78d   :  { %2009 = vtanh.f32 %v1748_v19 }
 0x79a   :  { %v2010_v23 = vpop.eup %2009 }
 0x79b   :  { %v1750_v62 = vmul.f32 %v2010_v23, %v1745_v22 }
 0x79d   :  { %1922 = vmatmul.mubr.f32.vlgmr.msra.gmra.mxu0 %v1750_v62 }
 0x85d   :  { %v1840_v4 = vpop.f32.mrf.mxu0 }
 0x85e   :  { %v1841_v2 = vadd.f32 %v1871_v8, %v1840_v4 }
 0x85f   :  { %v1923_v61 = vpop.f32.mrf.mxu0 }
 0x860   :  { %1845 = vst.msk [vmem:[%s3202_s6] sm:$0xff] %vm1844_vm3, %v1841_v2 }
 0x861   :  { %1850 = vsyncpa [#allocation5], 1 }

</bundles_post_ra>
